<compile_context>
chip_gen: v5e
topology: v5e:2x2
jax: 0.10.0
libtpu: 0.0.40
codegen_flags: <defaults>
</compile_context>

<pallas_src>
import numpy as np

import jax
import jax.numpy as jnp
from jax.experimental import pallas as pl
from jax.experimental.pallas import tpu as pltpu


# ----------------------------------------------------------------------------
# Configuration (mirrors the PyTorch module)
# ----------------------------------------------------------------------------
# (kh, kw, sh, sw, ph, pw, cin, cout) for the four gated conv blocks
LAYER_CFG = [
    (4, 4, 2, 2, 1, 1, 1, 8),
    (4, 4, 2, 2, 1, 1, 8, 16),
    (4, 4, 2, 2, 1, 1, 16, 32),
    (3, 4, 1, 2, 1, 1, 32, 16),
]
CLS_CFG = (1, 4, 1, 2, 0, 1, 16, 4)   # conv_classify (no bias, no BN)
LABEL_NUM = 4
BN_EPS = 1e-5
H_SLICE = 8                            # forward starts with input[:, :, :8, :]


# ----------------------------------------------------------------------------
# Fused Pallas kernel: whole ACLayer forward, all intermediates VMEM-resident.
# One wide-K MXU matmul + GLU epilogue per gated block, one matmul for the
# classifier, log-softmax + prod-over-W epilogue.  Grid tiles the batch rows.
# ----------------------------------------------------------------------------
def _ac_fused_kernel(x_ref,
                     m1_ref, b1_ref,
                     m2_ref, b2_ref,
                     m3_ref, b3_ref,
                     m4_ref, b4_ref,
                     mc_ref, ag_ref, al_ref,
                     out_ref):
    f32 = jnp.float32

    def dense_glu(h, m_ref, s_ref):
        # h: (bt, S_in*Cin) flattened activations; m: (S_in*Cin, 2*S_out*C);
        # s: (1, 2*S_out*C) folded BN shift (conv bias absorbed).
        # Columns are [main | gated], so the GLU is a single halving slice.
        z = jnp.dot(h, m_ref[...], preferred_element_type=f32) + s_ref[...]
        half = z.shape[-1] // 2
        return z[:, :half] * jax.nn.sigmoid(z[:, half:])   # f32 epilogue (v5e-safe)

    h = x_ref[...].astype(f32)                  # (bt, 8*W) raw input rows
    h = dense_glu(h, m1_ref, b1_ref)            # (bt, S1*C1)   K = 8*W
    h = dense_glu(h, m2_ref, b2_ref)            # (bt, S2*C2)   K = S1*C1
    h = dense_glu(h, m3_ref, b3_ref)            # (bt, S3*C3)
    h = dense_glu(h, m4_ref, b4_ref)            # (bt, S4*C4)

    # classifier conv (no bias): one matmul covering all W5 positions
    logit = jnp.dot(h, mc_ref[...], preferred_element_type=f32)     # (bt, W5*L)

    # log-softmax over labels per W position (stabilized with the per-row global
    # max; exact per-position max when W5 == 1), then prod over W positions as
    # exp(sum of log-probs).  exp/log go to the EUP; no VPU divide.
    w5 = ag_ref.shape[-1]
    gmax = jnp.max(logit, axis=-1, keepdims=True)                   # (bt, 1)
    gs = jnp.dot(jnp.exp(logit - gmax), ag_ref[...],
                 preferred_element_type=f32)                        # (bt, W5) per-pos denoms
    sum_lse = jnp.sum(jnp.log(gs), axis=-1, keepdims=True) + w5 * gmax
    sum_logit = jnp.dot(logit, al_ref[...], preferred_element_type=f32)  # (bt, L)
    out_ref[...] = jnp.exp(sum_logit - sum_lse)                     # prod_w softmax_w(l)


# ----------------------------------------------------------------------------
# pallas_call wrapper
# ----------------------------------------------------------------------------
def ac_fused_pallas(x_rows, ops, *, block_batch=None):
    b = x_rows.shape[0]
    lbl = ops["al"].shape[-1]
    if block_batch is None:
        # toy batch: whole batch in one grid step (no pipeline-step overhead);
        # production batch: tile by 8 so the "parallel" grid axis shards steps
        # across v7x's two TensorCores.  Size bt against v7x's 64 MiB VMEM
        # (constants here are only ~2.6 MiB) and set vmem_limit_bytes if needed.
        block_batch = 8 if (b > 8 and b % 8 == 0) else b
    assert b % block_batch == 0, "batch must be divisible by the batch tile"

    consts = [ops["m1"], ops["b1"], ops["m2"], ops["b2"],
              ops["m3"], ops["b3"], ops["m4"], ops["b4"],
              ops["mc"], ops["ag"], ops["al"]]

    def _row_spec(nrows, ncols):
        return pl.BlockSpec((nrows, ncols), lambda i: (i, 0))

    def _const_spec(shape):
        return pl.BlockSpec(shape, lambda i, _n=len(shape): (0,) * _n)

    return pl.pallas_call(
        _ac_fused_kernel,
        out_shape=jax.ShapeDtypeStruct((b, lbl), jnp.float32),
        grid=(b // block_batch,),
        in_specs=[_row_spec(block_batch, x_rows.shape[1])]
                 + [_const_spec(a.shape) for a in consts],
        out_specs=_row_spec(block_batch, lbl),
        compiler_params=pltpu.CompilerParams(
            dimension_semantics=("parallel",)),
    )(x_rows, *consts)


# ----------------------------------------------------------------------------
# Forward wrapper: the ONLY XLA-side glue is slicing H to 8 and one reshape.
# ----------------------------------------------------------------------------
def ac_layer_forward(x_nchw, ops):
    """ACLayer forward (classify=True path). Returns (prod_logit, logits)."""
    b = x_nchw.shape[0]
    x = x_nchw[:, 0, :H_SLICE, :]                # (B, 8, W), Cin == 1
    x_rows = x.reshape(b, -1)                    # (B, 8*W) row-major flatten
    out2d = ac_fused_pallas(x_rows, ops)         # (B, L)
    prod_logit = out2d[:, :, None]               # (B, L, H5 == 1)
    return prod_logit, out2d


# ----------------------------------------------------------------------------
# Parameters + operand folding (BN fold + conv-as-dense-matrix fold)
# ----------------------------------------------------------------------------
def make_params(key):
    """Raw params: conv weights in HWIO (kh,kw,cin,cout), plus inference-mode BN
    folded into a per-channel scale/shift (conv bias absorbed into the shift).
    (PyTorch checkpoints store (Cout,Cin,KH,KW); permute to HWIO before use.)"""
    params = {}
    for li, (kh, kw, _, _, _, _, cin, cout) in enumerate(LAYER_CFG):
        for br in ("m", "g"):
            key, k1, k2, k3, k4 = jax.random.split(key, 5)
            w = jax.random.normal(k1, (kh, kw, cin, cout), jnp.float32) * 0.1
            conv_b = jax.random.normal(k2, (cout,), jnp.float32) * 0.01
            gamma = jax.random.uniform(k3, (cout,), jnp.float32, 0.8, 1.2)
            beta = jax.random.normal(k4, (cout,), jnp.float32) * 0.05
            r_mean = jnp.zeros((cout,), jnp.float32)
            r_var = jnp.ones((cout,), jnp.float32)
            scale = gamma / jnp.sqrt(r_var + BN_EPS)
            shift = beta + (conv_b - r_mean) * scale
            params[f"w{li}{br}"] = w
            params[f"s{li}{br}"] = scale
            params[f"b{li}{br}"] = shift
    key, kc = jax.random.split(key)
    params["w_cls"] = jax.random.normal(kc, (1, 4, 16, LABEL_NUM), jnp.float32) * 0.1
    return params


def _conv_as_dense(w_hwio, ih, iw, oh, ow, kh, kw, sh, sw, ph, pw):
    """Express a zero-padded strided conv on row-major-flattened (H*W, Cin)
    feature vectors as a dense (S_in*Cin, S_out*Cout) matrix (batch-independent).
    Taps falling in the zero-padding region simply contribute nothing."""
    cin, cout = w_hwio.shape[2], w_hwio.shape[3]
    M = np.zeros((ih * iw * cin, oh * ow * cout), np.float32)
    for oi in range(oh):
        for oj in range(ow):
            so = oi * ow + oj
            for ki in range(kh):
                for kj in range(kw):
                    ii = oi * sh + ki - ph
                    jj = oj * sw + kj - pw
                    if 0 <= ii < ih and 0 <= jj < iw:
                        si = ii * iw + jj
                        M[si * cin:(si + 1) * cin, so * cout:(so + 1) * cout] += w_hwio[ki, kj]
    return M


def fold_operands(params, width):
    """Build the fused-kernel operands for a fixed input-width geometry."""
    ih, iw = H_SLICE, width
    geoms = []
    for (kh, kw, sh, sw, ph, pw, _ci, _co) in LAYER_CFG:
        oh = (ih + 2 * ph - kh) // sh + 1
        ow = (iw + 2 * pw - kw) // sw + 1
        assert oh >= 1 and ow >= 1, "input too small for the conv stack"
        geoms.append((ih, iw, oh, ow))
        ih, iw = oh, ow

    ops = {}
    for li, (kh, kw, sh, sw, ph, pw, _cin, cout) in enumerate(LAYER_CFG):
        lih, liw, loh, low = geoms[li]
        # fold the inference-mode BN scale into the conv weights
        wm = (np.asarray(params[f"w{li}m"]) * np.asarray(params[f"s{li}m"])).astype(np.float32)
        wg = (np.asarray(params[f"w{li}g"]) * np.asarray(params[f"s{li}g"])).astype(np.float32)
        mm = _conv_as_dense(wm, lih, liw, loh, low, kh, kw, sh, sw, ph, pw)
        mg = _conv_as_dense(wg, lih, liw, loh, low, kh, kw, sh, sw, ph, pw)
        s_out = loh * low
        shift = np.concatenate(
            [np.tile(np.asarray(params[f"b{li}m"], np.float32), s_out),
             np.tile(np.asarray(params[f"b{li}g"], np.float32), s_out)])[None, :]
        ops[f"m{li + 1}"] = jnp.asarray(np.concatenate([mm, mg], axis=1))  # [main | gated]
        ops[f"b{li + 1}"] = jnp.asarray(shift)

    # classifier conv (no bias / BN)
    kh, kw, sh, sw, ph, pw, _cin, lbl = CLS_CFG
    cih, ciw = geoms[-1][2], geoms[-1][3]                       # conv4 output (H4, W4)
    oh5 = (cih + 2 * ph - kh) // sh + 1
    ow5 = (ciw + 2 * pw - kw) // sw + 1
    assert oh5 == 1, "reference's logits view() requires classifier output H == 1"
    assert ow5 >= 1, "input width too small for the classifier conv"
    ops["mc"] = jnp.asarray(_conv_as_dense(np.asarray(params["w_cls"], np.float32),
                                           cih, ciw, oh5, ow5, kh, kw, sh, sw, ph, pw))

    # prod-over-W helpers (tiny one-hot matrices, column index of logits = w*L + l):
    #   ag: per-position softmax-denominator pooling, al: per-label log-prob summation.
    ag = np.zeros((ow5 * lbl, ow5), np.float32)
    al = np.zeros((ow5 * lbl, lbl), np.float32)
    for w in range(ow5):
        for l in range(lbl):
            ag[w * lbl + l, w] = 1.0
            al[w * lbl + l, l] = 1.0
    ops["ag"] = jnp.asarray(ag)
    ops["al"] = jnp.asarray(al)
    return ops


# ----------------------------------------------------------------------------
# Pure-JAX reference (lax.conv) for numerical validation
# ----------------------------------------------------------------------------
def _conv_nhwc(x, w, stride, pad):
    return jax.lax.conv_general_dilated(
        x, w, window_strides=stride,
        padding=((pad[0], pad[0]), (pad[1], pad[1])),
        dimension_numbers=("NHWC", "HWIO", "NHWC"))


def reference_forward(x_nchw, params):
    x = x_nchw[:, :, :H_SLICE, :]
    h = jnp.transpose(x, (0, 2, 3, 1))
    for li, (kh, kw, sh, sw, ph, pw, _cin, _cout) in enumerate(LAYER_CFG):
        ym = _conv_nhwc(h, params[f"w{li}m"], (sh, sw), (ph, pw)) * params[f"s{li}m"] + params[f"b{li}m"]
        yg = _conv_nhwc(h, params[f"w{li}g"], (sh, sw), (ph, pw)) * params[f"s{li}g"] + params[f"b{li}g"]
        h = ym * jax.nn.sigmoid(yg)
    logits = _conv_nhwc(h, params["w_cls"], (1, 2), (0, 1))       # (B, H5, W5, L)
    probs = jax.nn.softmax(logits, axis=-1)
    prod = jnp.prod(probs, axis=2)                                # (B, H5, L)
    prod_logit = jnp.transpose(prod, (0, 2, 1))                   # (B, L, H5)
    return prod_logit, prod_logit.reshape(prod_logit.shape[0], LABEL_NUM)


# ----------------------------------------------------------------------------
if __name__ == "__main__":
    # Spatial W must be >= 32 for the conv stack to produce a valid classifier size.
    B, W = 2, 32
    x = jax.random.normal(jax.random.PRNGKey(0), (B, 1, 16, W), jnp.float32)
    params = make_params(jax.random.PRNGKey(1))
    ops = fold_operands(params, W)

    fwd = jax.jit(ac_layer_forward)
    prod_logit, logits = fwd(x, ops)
    jax.block_until_ready((prod_logit, logits))

    assert prod_logit.shape == (B, LABEL_NUM, 1), prod_logit.shape
    assert logits.shape == (B, LABEL_NUM), logits.shape
    assert bool(jnp.all(jnp.isfinite(prod_logit))) and bool(jnp.all(jnp.isfinite(logits)))

    # numerical cross-check against the pure-JAX lax.conv reference
    ref_pl, ref_lg = jax.jit(reference_forward)(x, params)
    np.testing.assert_allclose(np.asarray(prod_logit), np.asarray(ref_pl), rtol=2e-3, atol=2e-3)
    np.testing.assert_allclose(np.asarray(logits), np.asarray(ref_lg), rtol=2e-3, atol=2e-3)

    print("KERNEL_OK")
</pallas_src>

<mosaic_0001>
module attributes {stable_mosaic.version = 11 : i64} {
  func.func @_ac_fused_kernel(%arg0: i32, %arg1: memref<2x256xf32, #tpu.memory_space<vmem>>, %arg2: memref<256x1024xf32, #tpu.memory_space<vmem>>, %arg3: memref<1x1024xf32, #tpu.memory_space<vmem>>, %arg4: memref<512x512xf32, #tpu.memory_space<vmem>>, %arg5: memref<1x512xf32, #tpu.memory_space<vmem>>, %arg6: memref<256x256xf32, #tpu.memory_space<vmem>>, %arg7: memref<1x256xf32, #tpu.memory_space<vmem>>, %arg8: memref<128x64xf32, #tpu.memory_space<vmem>>, %arg9: memref<1x64xf32, #tpu.memory_space<vmem>>, %arg10: memref<32x4xf32, #tpu.memory_space<vmem>>, %arg11: memref<4x1xf32, #tpu.memory_space<vmem>>, %arg12: memref<4x4xf32, #tpu.memory_space<vmem>>, %arg13: memref<2x4xf32, #tpu.memory_space<vmem>>) attributes {dimension_semantics = [#tpu.dimension_semantics<parallel>], iteration_bounds = array<i64: 1>, scalar_prefetch = 0 : i64, scratch_operands = 0 : i64, tpu.core_type = #tpu.core_type<tc>, window_params = [{transform_indices = @transform_0, window_bounds = array<i64: 2, 256>}, {pipeline_mode = #tpu.pipeline_mode<synchronous>, transform_indices = @transform_1, window_bounds = array<i64: 256, 1024>}, {pipeline_mode = #tpu.pipeline_mode<synchronous>, transform_indices = @transform_2, window_bounds = array<i64: 1, 1024>}, {pipeline_mode = #tpu.pipeline_mode<synchronous>, transform_indices = @transform_3, window_bounds = array<i64: 512, 512>}, {pipeline_mode = #tpu.pipeline_mode<synchronous>, transform_indices = @transform_4, window_bounds = array<i64: 1, 512>}, {pipeline_mode = #tpu.pipeline_mode<synchronous>, transform_indices = @transform_5, window_bounds = array<i64: 256, 256>}, {pipeline_mode = #tpu.pipeline_mode<synchronous>, transform_indices = @transform_6, window_bounds = array<i64: 1, 256>}, {pipeline_mode = #tpu.pipeline_mode<synchronous>, transform_indices = @transform_7, window_bounds = array<i64: 128, 64>}, {pipeline_mode = #tpu.pipeline_mode<synchronous>, transform_indices = @transform_8, window_bounds = array<i64: 1, 64>}, {pipeline_mode = #tpu.pipeline_mode<synchronous>, transform_indices = @transform_9, window_bounds = array<i64: 32, 4>}, {pipeline_mode = #tpu.pipeline_mode<synchronous>, transform_indices = @transform_10, window_bounds = array<i64: 4, 1>}, {pipeline_mode = #tpu.pipeline_mode<synchronous>, transform_indices = @transform_11, window_bounds = array<i64: 4, 4>}, {transform_indices = @transform_12, window_bounds = array<i64: 2, 4>}]} {
    %c0 = arith.constant 0 : index
    %c0_0 = arith.constant 0 : index
    %0 = vector.load %arg1[%c0, %c0_0] : memref<2x256xf32, #tpu.memory_space<vmem>>, vector<2x256xf32>
    %c0_1 = arith.constant 0 : index
    %c0_2 = arith.constant 0 : index
    %1 = vector.load %arg2[%c0_1, %c0_2] : memref<256x1024xf32, #tpu.memory_space<vmem>>, vector<256x1024xf32>
    %cst = arith.constant dense<0.000000e+00> : vector<2x1024xf32>
    %2 = tpu.matmul %0, %1, %cst {dimension_numbers = #tpu.dot_dimension_numbers<[1], [0], [0], [1], [0, 0, 1, 1], [], []>} : vector<2x256xf32>, vector<256x1024xf32>, vector<2x1024xf32> -> vector<2x1024xf32>
    %c0_3 = arith.constant 0 : index
    %c0_4 = arith.constant 0 : index
    %3 = vector.load %arg3[%c0_3, %c0_4] : memref<1x1024xf32, #tpu.memory_space<vmem>>, vector<1x1024xf32>
    %4 = vector.broadcast %3 : vector<1x1024xf32> to vector<2x1024xf32>
    %5 = arith.addf %2, %4 : vector<2x1024xf32>
    %6 = vector.extract_strided_slice %5 {offsets = [0, 0], sizes = [2, 512], strides = [1, 1]} : vector<2x1024xf32> to vector<2x512xf32>
    %7 = vector.extract_strided_slice %5 {offsets = [0, 512], sizes = [2, 512], strides = [1, 1]} : vector<2x1024xf32> to vector<2x512xf32>
    %8 = arith.negf %7 : vector<2x512xf32>
    %9 = math.exp %8 : vector<2x512xf32>
    %cst_5 = arith.constant 1.000000e+00 : f32
    %10 = vector.broadcast %cst_5 : f32 to vector<2x512xf32>
    %11 = arith.addf %10, %9 : vector<2x512xf32>
    %12 = arith.divf %10, %11 : vector<2x512xf32>
    %13 = arith.mulf %6, %12 : vector<2x512xf32>
    %c0_6 = arith.constant 0 : index
    %c0_7 = arith.constant 0 : index
    %14 = vector.load %arg4[%c0_6, %c0_7] : memref<512x512xf32, #tpu.memory_space<vmem>>, vector<512x512xf32>
    %cst_8 = arith.constant dense<0.000000e+00> : vector<2x512xf32>
    %15 = tpu.matmul %13, %14, %cst_8 {dimension_numbers = #tpu.dot_dimension_numbers<[1], [0], [0], [1], [0, 0, 1, 1], [], []>} : vector<2x512xf32>, vector<512x512xf32>, vector<2x512xf32> -> vector<2x512xf32>
    %c0_9 = arith.constant 0 : index
    %c0_10 = arith.constant 0 : index
    %16 = vector.load %arg5[%c0_9, %c0_10] : memref<1x512xf32, #tpu.memory_space<vmem>>, vector<1x512xf32>
    %17 = vector.broadcast %16 : vector<1x512xf32> to vector<2x512xf32>
    %18 = arith.addf %15, %17 : vector<2x512xf32>
    %19 = vector.extract_strided_slice %18 {offsets = [0, 0], sizes = [2, 256], strides = [1, 1]} : vector<2x512xf32> to vector<2x256xf32>
    %20 = vector.extract_strided_slice %18 {offsets = [0, 256], sizes = [2, 256], strides = [1, 1]} : vector<2x512xf32> to vector<2x256xf32>
    %21 = arith.negf %20 : vector<2x256xf32>
    %22 = math.exp %21 : vector<2x256xf32>
    %cst_11 = arith.constant 1.000000e+00 : f32
    %23 = vector.broadcast %cst_11 : f32 to vector<2x256xf32>
    %24 = arith.addf %23, %22 : vector<2x256xf32>
    %25 = arith.divf %23, %24 : vector<2x256xf32>
    %26 = arith.mulf %19, %25 : vector<2x256xf32>
    %c0_12 = arith.constant 0 : index
    %c0_13 = arith.constant 0 : index
    %27 = vector.load %arg6[%c0_12, %c0_13] : memref<256x256xf32, #tpu.memory_space<vmem>>, vector<256x256xf32>
    %cst_14 = arith.constant dense<0.000000e+00> : vector<2x256xf32>
    %28 = tpu.matmul %26, %27, %cst_14 {dimension_numbers = #tpu.dot_dimension_numbers<[1], [0], [0], [1], [0, 0, 1, 1], [], []>} : vector<2x256xf32>, vector<256x256xf32>, vector<2x256xf32> -> vector<2x256xf32>
    %c0_15 = arith.constant 0 : index
    %c0_16 = arith.constant 0 : index
    %29 = vector.load %arg7[%c0_15, %c0_16] : memref<1x256xf32, #tpu.memory_space<vmem>>, vector<1x256xf32>
    %30 = vector.broadcast %29 : vector<1x256xf32> to vector<2x256xf32>
    %31 = arith.addf %28, %30 : vector<2x256xf32>
    %32 = vector.extract_strided_slice %31 {offsets = [0, 0], sizes = [2, 128], strides = [1, 1]} : vector<2x256xf32> to vector<2x128xf32>
    %33 = vector.extract_strided_slice %31 {offsets = [0, 128], sizes = [2, 128], strides = [1, 1]} : vector<2x256xf32> to vector<2x128xf32>
    %34 = arith.negf %33 : vector<2x128xf32>
    %35 = math.exp %34 : vector<2x128xf32>
    %cst_17 = arith.constant 1.000000e+00 : f32
    %36 = vector.broadcast %cst_17 : f32 to vector<2x128xf32>
    %37 = arith.addf %36, %35 : vector<2x128xf32>
    %38 = arith.divf %36, %37 : vector<2x128xf32>
    %39 = arith.mulf %32, %38 : vector<2x128xf32>
    %c0_18 = arith.constant 0 : index
    %c0_19 = arith.constant 0 : index
    %40 = vector.load %arg8[%c0_18, %c0_19] : memref<128x64xf32, #tpu.memory_space<vmem>>, vector<128x64xf32>
    %cst_20 = arith.constant dense<0.000000e+00> : vector<2x64xf32>
    %41 = tpu.matmul %39, %40, %cst_20 {dimension_numbers = #tpu.dot_dimension_numbers<[1], [0], [0], [1], [0, 0, 1, 1], [], []>} : vector<2x128xf32>, vector<128x64xf32>, vector<2x64xf32> -> vector<2x64xf32>
    %c0_21 = arith.constant 0 : index
    %c0_22 = arith.constant 0 : index
    %42 = vector.load %arg9[%c0_21, %c0_22] : memref<1x64xf32, #tpu.memory_space<vmem>>, vector<1x64xf32>
    %43 = vector.broadcast %42 : vector<1x64xf32> to vector<2x64xf32>
    %44 = arith.addf %41, %43 : vector<2x64xf32>
    %45 = vector.extract_strided_slice %44 {offsets = [0, 0], sizes = [2, 32], strides = [1, 1]} : vector<2x64xf32> to vector<2x32xf32>
    %46 = vector.extract_strided_slice %44 {offsets = [0, 32], sizes = [2, 32], strides = [1, 1]} : vector<2x64xf32> to vector<2x32xf32>
    %47 = arith.negf %46 : vector<2x32xf32>
    %48 = math.exp %47 : vector<2x32xf32>
    %cst_23 = arith.constant 1.000000e+00 : f32
    %49 = vector.broadcast %cst_23 : f32 to vector<2x32xf32>
    %50 = arith.addf %49, %48 : vector<2x32xf32>
    %51 = arith.divf %49, %50 : vector<2x32xf32>
    %52 = arith.mulf %45, %51 : vector<2x32xf32>
    %c0_24 = arith.constant 0 : index
    %c0_25 = arith.constant 0 : index
    %53 = vector.load %arg10[%c0_24, %c0_25] : memref<32x4xf32, #tpu.memory_space<vmem>>, vector<32x4xf32>
    %cst_26 = arith.constant dense<0.000000e+00> : vector<2x4xf32>
    %54 = tpu.matmul %52, %53, %cst_26 {dimension_numbers = #tpu.dot_dimension_numbers<[1], [0], [0], [1], [0, 0, 1, 1], [], []>} : vector<2x32xf32>, vector<32x4xf32>, vector<2x4xf32> -> vector<2x4xf32>
    %cst_27 = arith.constant dense<0xFF800000> : vector<2xf32>
    %55 = vector.multi_reduction <maximumf>, %54, %cst_27 [1] : vector<2x4xf32> to vector<2xf32>
    %56 = vector.shape_cast %55 : vector<2xf32> to vector<2x1xf32>
    %57 = vector.broadcast %56 : vector<2x1xf32> to vector<2x4xf32>
    %58 = arith.subf %54, %57 : vector<2x4xf32>
    %59 = math.exp %58 : vector<2x4xf32>
    %c0_28 = arith.constant 0 : index
    %c0_29 = arith.constant 0 : index
    %60 = vector.load %arg11[%c0_28, %c0_29] : memref<4x1xf32, #tpu.memory_space<vmem>>, vector<4x1xf32>
    %cst_30 = arith.constant dense<0.000000e+00> : vector<2x1xf32>
    %61 = tpu.matmul %59, %60, %cst_30 {dimension_numbers = #tpu.dot_dimension_numbers<[1], [0], [0], [1], [0, 0, 1, 1], [], []>} : vector<2x4xf32>, vector<4x1xf32>, vector<2x1xf32> -> vector<2x1xf32>
    %62 = math.log %61 : vector<2x1xf32>
    %cst_31 = arith.constant dense<0.000000e+00> : vector<2xf32>
    %63 = vector.multi_reduction <add>, %62, %cst_31 [1] : vector<2x1xf32> to vector<2xf32>
    %64 = vector.shape_cast %63 : vector<2xf32> to vector<2x1xf32>
    %cst_32 = arith.constant 1.000000e+00 : f32
    %65 = vector.broadcast %cst_32 : f32 to vector<2x1xf32>
    %66 = arith.mulf %65, %56 : vector<2x1xf32>
    %67 = arith.addf %64, %66 : vector<2x1xf32>
    %c0_33 = arith.constant 0 : index
    %c0_34 = arith.constant 0 : index
    %68 = vector.load %arg12[%c0_33, %c0_34] : memref<4x4xf32, #tpu.memory_space<vmem>>, vector<4x4xf32>
    %cst_35 = arith.constant dense<0.000000e+00> : vector<2x4xf32>
    %69 = tpu.matmul %54, %68, %cst_35 {dimension_numbers = #tpu.dot_dimension_numbers<[1], [0], [0], [1], [0, 0, 1, 1], [], []>} : vector<2x4xf32>, vector<4x4xf32>, vector<2x4xf32> -> vector<2x4xf32>
    %70 = vector.broadcast %67 : vector<2x1xf32> to vector<2x4xf32>
    %71 = arith.subf %69, %70 : vector<2x4xf32>
    %72 = math.exp %71 : vector<2x4xf32>
    %c0_36 = arith.constant 0 : index
    %c0_37 = arith.constant 0 : index
    %73 = vector.load %arg13[%c0_36, %c0_37] : memref<2x4xf32, #tpu.memory_space<vmem>>, vector<2x4xf32>
    tpu.vector_store %arg13[%c0_36, %c0_37], %72 {strides = array<i32>} : memref<2x4xf32, #tpu.memory_space<vmem>>, vector<2x4xf32>,
    return
  }
  func.func @transform_0(%arg0: i32) -> (i32, i32) {
    %c0_i32 = arith.constant 0 : i32
    %c0_i32_0 = arith.constant 0 : i32
    return %arg0, %c0_i32 : i32, i32
  }
  func.func @transform_1(%arg0: i32) -> (i32, i32) {
    %c0_i32 = arith.constant 0 : i32
    %c0_i32_0 = arith.constant 0 : i32
    %c0_i32_1 = arith.constant 0 : i32
    return %c0_i32, %c0_i32_0 : i32, i32
  }
  func.func @transform_2(%arg0: i32) -> (i32, i32) {
    %c0_i32 = arith.constant 0 : i32
    %c0_i32_0 = arith.constant 0 : i32
    %c0_i32_1 = arith.constant 0 : i32
    return %c0_i32, %c0_i32_0 : i32, i32
  }
  func.func @transform_3(%arg0: i32) -> (i32, i32) {
    %c0_i32 = arith.constant 0 : i32
    %c0_i32_0 = arith.constant 0 : i32
    %c0_i32_1 = arith.constant 0 : i32
    return %c0_i32, %c0_i32_0 : i32, i32
  }
  func.func @transform_4(%arg0: i32) -> (i32, i32) {
    %c0_i32 = arith.constant 0 : i32
    %c0_i32_0 = arith.constant 0 : i32
    %c0_i32_1 = arith.constant 0 : i32
    return %c0_i32, %c0_i32_0 : i32, i32
  }
  func.func @transform_5(%arg0: i32) -> (i32, i32) {
    %c0_i32 = arith.constant 0 : i32
    %c0_i32_0 = arith.constant 0 : i32
    %c0_i32_1 = arith.constant 0 : i32
    return %c0_i32, %c0_i32_0 : i32, i32
  }
  func.func @transform_6(%arg0: i32) -> (i32, i32) {
    %c0_i32 = arith.constant 0 : i32
    %c0_i32_0 = arith.constant 0 : i32
    %c0_i32_1 = arith.constant 0 : i32
    return %c0_i32, %c0_i32_0 : i32, i32
  }
  func.func @transform_7(%arg0: i32) -> (i32, i32) {
    %c0_i32 = arith.constant 0 : i32
    %c0_i32_0 = arith.constant 0 : i32
    %c0_i32_1 = arith.constant 0 : i32
    return %c0_i32, %c0_i32_0 : i32, i32
  }
  func.func @transform_8(%arg0: i32) -> (i32, i32) {
    %c0_i32 = arith.constant 0 : i32
    %c0_i32_0 = arith.constant 0 : i32
    %c0_i32_1 = arith.constant 0 : i32
    return %c0_i32, %c0_i32_0 : i32, i32
  }
  func.func @transform_9(%arg0: i32) -> (i32, i32) {
    %c0_i32 = arith.constant 0 : i32
    %c0_i32_0 = arith.constant 0 : i32
    %c0_i32_1 = arith.constant 0 : i32
    return %c0_i32, %c0_i32_0 : i32, i32
  }
  func.func @transform_10(%arg0: i32) -> (i32, i32) {
    %c0_i32 = arith.constant 0 : i32
    %c0_i32_0 = arith.constant 0 : i32
    %c0_i32_1 = arith.constant 0 : i32
    return %c0_i32, %c0_i32_0 : i32, i32
  }
  func.func @transform_11(%arg0: i32) -> (i32, i32) {
    %c0_i32 = arith.constant 0 : i32
    %c0_i32_0 = arith.constant 0 : i32
    %c0_i32_1 = arith.constant 0 : i32
    return %c0_i32, %c0_i32_0 : i32, i32
  }
  func.func @transform_12(%arg0: i32) -> (i32, i32) {
    %c0_i32 = arith.constant 0 : i32
    %c0_i32_0 = arith.constant 0 : i32
    return %arg0, %c0_i32 : i32, i32
  }
}

</mosaic_0001>

<bundles_post_ra>
// kernel: squeeze.1
= control target key start
LH: loop header
LB: loop body
LE: loop exit
PB: predicated region body
PF: predicated region fallthrough
CT: control target
= control target key end

     0   :  { %s50_s8 = smov 96   ;;  %s51_s11 = smov 32   ;;  %vm3_vm0 = vcmask 261120   ;;  %vm11_vm1 = vcmask 1048320   ;;  %vm19_vm2 = vcmask 785920   ;;  %vm27_vm3 = vcmask 523520   ;;  %s81_s0 = inlined_call_operand.vmem [shape: f32[2,1,8,32], index: 0, kind: input, shape index: {}]   ;;  %s82_s1 = inlined_call_operand.vmem [shape: f32[2,256], index: 1, kind: output, shape index: {}]  }
   0x1   :  { %v43_v0 = vld.sshfl [vmem:[%s81_s0 + $0x3] sm:$0xff pattern:$0xccccc480]   ;;  %v45_v1 = vld.sshfl [vmem:[%s81_s0 + $0x1] sm:$0xff pattern:$0xccccc480]  }
   0x2   :  { %9 = vrot.lane.b32.xlu0 %v43_v0, %s50_s8  ;;  %25 = vrot.lane.b32.xlu1 %v45_v1, %s51_s11  ;;  %v44_v2 = vld.sshfl [vmem:[%s81_s0 + $0x2] sm:$0xff pattern:$0xccccc480]   ;;  %s52_s14 = smov 64  }
   0x3   :  { %v2_v3 = vld [vmem:[%s81_s0] ss:$4 sm:$0xf]  }
   0x4   :  { %4 = vst.msk [vmem:[#allocation0] ss:$8 sm:$0x3] %vm3_vm0, %v2_v3  }
   0x5   :  { %6 = vst.msk [vmem:[#allocation0 - $0xf] ss:$8 sm:$0xc] %vm3_vm0, %v2_v3  }
   0xa   :  { %17 = vrot.lane.b32.xlu0 %v44_v2, %s52_s14 }
  0x74   :  { %v10_v4 = vpop.permute.xlu0 %9   ;;  %v26_v5 = vpop.permute.xlu1 %25  }
  0x75   :  { %12 = vst.msk [vmem:[#allocation0] sm:$0x3] %vm11_vm1, %v10_v4  }
  0x76   :  { %14 = vst.msk [vmem:[#allocation0 + $0x6] sm:$0xc] %vm11_vm1, %v10_v4  }
  0x7c   :  { %v18_v6 = vpop.permute.xlu0 %17  }
  0x7d   :  { %20 = vst.msk [vmem:[#allocation0] sm:$0x3] %vm19_vm2, %v18_v6  }
  0x7e   :  { %22 = vst.msk [vmem:[#allocation0 + $0x6] sm:$0xc] %vm19_vm2, %v18_v6  }
  0x7f   :  { %28 = vst.msk [vmem:[#allocation0] sm:$0x3] %vm27_vm3, %v26_v5  }
  0x80   :  { %30 = vst.msk [vmem:[#allocation0 + $0x6] sm:$0xc] %vm27_vm3, %v26_v5  }
  0x86   :  { %v33_v7 = vld [vmem:[#allocation0] sm:$0x3] }
  0x87   :  { %36 = vst [vmem:[%s82_s1] sm:$0x3] %v33_v7  ;;  %v38_v8 = vld [vmem:[#allocation0 + $0x8] sm:$0x3] }
  0x88   :  { %46 = vst [vmem:[%s82_s1 + $0x2] sm:$0x3] %v38_v8 }

// kernel: ac_layer_forward.1
= control target key start
LH: loop header
LB: loop body
LE: loop exit
PB: predicated region body
PF: predicated region fallthrough
CT: control target
= control target key end

     0   :  { %17 = vsyncpa [#allocation3], 0  ;;  %s2173_s0 = inlined_call_operand.vmem [shape: f32[2,256], index: 0, kind: input, shape index: {}]   ;;  %s2174_s1 = inlined_call_operand.hbm [shape: f32[256,1024], index: 1, kind: input, shape index: {}]   ;;  %s2175_s2 = inlined_call_operand.vmem [shape: f32[1,1024], index: 2, kind: input, shape index: {}]   ;;  %s2176_s3 = inlined_call_operand.hbm [shape: f32[512,512], index: 3, kind: input, shape index: {}]   ;;  %s2177_s4 = inlined_call_operand.vmem [shape: f32[1,512], index: 4, kind: input, shape index: {}]   ;;  %s2178_s5 = inlined_call_operand.hbm [shape: f32[256,256], index: 5, kind: input, shape index: {}]   ;;  %s2179_s6 = inlined_call_operand.vmem [shape: f32[1,256], index: 6, kind: input, shape index: {}]   ;;  %s2180_s7 = inlined_call_operand.vmem [shape: f32[128,64], index: 7, kind: input, shape index: {}]   ;;  %s2181_s8 = inlined_call_operand.vmem [shape: f32[1,64], index: 8, kind: input, shape index: {}]   ;;  %s2182_s9 = inlined_call_operand.vmem [shape: f32[32,4], index: 9, kind: input, shape index: {}]   ;;  %s2183_s10 = inlined_call_operand.vmem [shape: f32[4,1], index: 10, kind: input, shape index: {}]   ;;  %s2184_s11 = inlined_call_operand.vmem [shape: f32[4,4], index: 11, kind: input, shape index: {}]   ;;  %s2185_s12 = inlined_call_operand.vmem [shape: f32[2,4], index: 12, kind: output, shape index: {}]  }
   0x1   :  { %18 = vsyncpa [#allocation5], 0  ;;  %s40_s23 = sshll.u32 %s2176_s3, 4  ;;  %s1880_s24 = smov [#allocation4]   ;;  %s41_s23 = int_to_ptr.hbm [resolvable:$true] %s40_s23 }
   0x2   :  { %s42_s25 = sshll.u32 %s1880_s24, 4  ;;  %s25_s28 = sshll.u32 %s2174_s1, 4  ;;  %s43_s25 = int_to_ptr.vmem [resolvable:$true] %s42_s25  ;;  %s26_s28 = int_to_ptr.hbm [resolvable:$true] %s25_s28 }
   0x3   :  { %s1881_s29 = smov 512   ;;  %s1882_s30 = smov 32  }
   0x4   :  { %48 = dma.hbm_to_vmem [thread:$0]  %s41_s23, 32768, %s43_s25, [#allocation5], %s1881_s29, %s1881_s29, %s1882_s30  }
   0x5   :  { %s1883_s13 = smov [#allocation2]   ;;  %s1884_s15 = smov 1024  }
   0x6   :  { %s27_s14 = sshll.u32 %s1883_s13, 4  ;;  %s1885_s16 = smov 64   ;;  %s28_s14 = int_to_ptr.vmem [resolvable:$true] %s27_s14 }
   0x7   :  { %33 = dma.hbm_to_vmem [thread:$0]  %s26_s28, 32768, %s28_s14, [#allocation3], %s1884_s15, %s1884_s15, %s1885_s16  }
   0x8   :  { %s55_s18 = sshll.u32 %s2178_s5, 4  ;;  %s1886_s19 = smov [#allocation6]   ;;  %s56_s18 = int_to_ptr.hbm [resolvable:$true] %s55_s18 }
   0x9   :  { %s57_s20 = sshll.u32 %s1886_s19, 4  ;;  %s1887_s21 = smov 256   ;;  %s58_s20 = int_to_ptr.vmem [resolvable:$true] %s57_s20 }
   0xa   :  { %s1888_s1 = smov 16  }
   0xb   :  { %63 = dma.hbm_to_vmem [thread:$0]  %s56_s18, 8192, %s58_s20, [#allocation5], %s1887_s21, %s1887_s21, %s1888_s1  }
   0xc   :  { %1876 = dma.done.wait [#allocation3], 32768  }
   0xd   :  { %1877 = vsyncadd [#allocation3], 4294934528 }
   0xe   :  { %1878 = dma.done.wait [#allocation5], 40960  }
   0xf   :  { %1879 = vsyncadd [#allocation5], 4294926336  ;;  %v209_v0 = vld [vmem:[#allocation2 + $0x3c0] sm:$0xff]  ;;  %v210_v1 = vld [vmem:[#allocation2 + $0x3c8] sm:$0xff] }
  0x10   :  { %v201_v2 = vld [vmem:[#allocation2 + $0x380] sm:$0xff]  ;;  %369 = vmatpush.msra.mxu0 %v209_v0  ;;  %409 = vmatpush.msra.mxu2 %v210_v1  ;;  %v202_v4 = vld [vmem:[#allocation2 + $0x388] sm:$0xff]  ;;  %v211_v62 = vld [vmem:[#allocation2 + $0x3d0] sm:$0xff] }
  0x11   :  { %v337_v3 = vld [vmem:[#allocation2 + $0x7c0] sm:$0xff]  ;;  %v338_v5 = vld [vmem:[#allocation2 + $0x7c8] sm:$0xff]  ;;  %v212_v63 = vld [vmem:[#allocation2 + $0x3d8] sm:$0xff] }
  0x12   :  { %389 = vmatpush.msra.mxu1 %v337_v3  ;;  %429 = vmatpush.msra.mxu3 %v338_v5  ;;  %v193_v6 = vld [vmem:[#allocation2 + $0x340] sm:$0xff]  ;;  %v194_v8 = vld [vmem:[#allocation2 + $0x348] sm:$0xff]  ;;  %v339_v3 = vld [vmem:[#allocation2 + $0x7d0] sm:$0xff] }
  0x13   :  { %v329_v7 = vld [vmem:[#allocation2 + $0x780] sm:$0xff]  ;;  %370 = vmatpush.msra.mxu0 %v201_v2  ;;  %410 = vmatpush.msra.mxu2 %v202_v4  ;;  %v330_v9 = vld [vmem:[#allocation2 + $0x788] sm:$0xff]  ;;  %v203_v2 = vld [vmem:[#allocation2 + $0x390] sm:$0xff] }
  0x14   :  { %v321_v10 = vld [vmem:[#allocation2 + $0x740] sm:$0xff]  ;;  %390 = vmatpush.msra.mxu1 %v329_v7  ;;  %430 = vmatpush.msra.mxu3 %v330_v9  ;;  %v186_v12 = vld [vmem:[#allocation2 + $0x308] sm:$0xff]  ;;  %v204_v4 = vld [vmem:[#allocation2 + $0x398] sm:$0xff] }
  0x15   :  { %v185_v11 = vld [vmem:[#allocation2 + $0x300] sm:$0xff]  ;;  %v322_v13 = vld [vmem:[#allocation2 + $0x748] sm:$0xff]  ;;  %371 = vmatpush.msra.mxu0 %v193_v6  ;;  %411 = vmatpush.msra.mxu2 %v194_v8  ;;  %v340_v5 = vld [vmem:[#allocation2 + $0x7d8] sm:$0xff] }
  0x16   :  { %v313_v14 = vld [vmem:[#allocation2 + $0x700] sm:$0xff]  ;;  %v314_v15 = vld [vmem:[#allocation2 + $0x708] sm:$0xff]  ;;  %391 = vmatpush.msra.mxu1 %v321_v10  ;;  %431 = vmatpush.msra.mxu3 %v322_v13  ;;  %v195_v6 = vld [vmem:[#allocation2 + $0x350] sm:$0xff] }
  0x17   :  { %v177_v16 = vld [vmem:[#allocation2 + $0x2c0] sm:$0xff]  ;;  %v178_v17 = vld [vmem:[#allocation2 + $0x2c8] sm:$0xff]  ;;  %372 = vmatpush.msra.mxu0 %v185_v11  ;;  %412 = vmatpush.msra.mxu2 %v186_v12  ;;  %v331_v7 = vld [vmem:[#allocation2 + $0x790] sm:$0xff] }
  0x18   :  { %v305_v18 = vld [vmem:[#allocation2 + $0x6c0] sm:$0xff]  ;;  %v306_v19 = vld [vmem:[#allocation2 + $0x6c8] sm:$0xff]  ;;  %392 = vmatpush.msra.mxu1 %v313_v14  ;;  %432 = vmatpush.msra.mxu3 %v314_v15  ;;  %v196_v8 = vld [vmem:[#allocation2 + $0x358] sm:$0xff] }
  0x19   :  { %v169_v20 = vld [vmem:[#allocation2 + $0x280] sm:$0xff]  ;;  %v170_v21 = vld [vmem:[#allocation2 + $0x288] sm:$0xff]  ;;  %373 = vmatpush.msra.mxu0 %v177_v16  ;;  %413 = vmatpush.msra.mxu2 %v178_v17  ;;  %v332_v9 = vld [vmem:[#allocation2 + $0x798] sm:$0xff] }
  0x1a   :  { %v297_v22 = vld [vmem:[#allocation2 + $0x680] sm:$0xff]  ;;  %v298_v23 = vld [vmem:[#allocation2 + $0x688] sm:$0xff]  ;;  %393 = vmatpush.msra.mxu1 %v305_v18  ;;  %433 = vmatpush.msra.mxu3 %v306_v19  ;;  %v187_v10 = vld [vmem:[#allocation2 + $0x310] sm:$0xff] }
  0x1b   :  { %v161_v24 = vld [vmem:[#allocation2 + $0x240] sm:$0xff]  ;;  %v162_v25 = vld [vmem:[#allocation2 + $0x248] sm:$0xff]  ;;  %374 = vmatpush.msra.mxu0 %v169_v20  ;;  %414 = vmatpush.msra.mxu2 %v170_v21  ;;  %v323_v11 = vld [vmem:[#allocation2 + $0x750] sm:$0xff] }
  0x1c   :  { %v289_v26 = vld [vmem:[#allocation2 + $0x640] sm:$0xff]  ;;  %v290_v27 = vld [vmem:[#allocation2 + $0x648] sm:$0xff]  ;;  %394 = vmatpush.msra.mxu1 %v297_v22  ;;  %434 = vmatpush.msra.mxu3 %v298_v23  ;;  %v188_v12 = vld [vmem:[#allocation2 + $0x318] sm:$0xff] }
  0x1d   :  { %v153_v28 = vld [vmem:[#allocation2 + $0x200] sm:$0xff]  ;;  %v154_v29 = vld [vmem:[#allocation2 + $0x208] sm:$0xff]  ;;  %375 = vmatpush.msra.mxu0 %v161_v24  ;;  %415 = vmatpush.msra.mxu2 %v162_v25  ;;  %v324_v13 = vld [vmem:[#allocation2 + $0x758] sm:$0xff] }
  0x1e   :  { %v281_v30 = vld [vmem:[#allocation2 + $0x600] sm:$0xff]  ;;  %v282_v31 = vld [vmem:[#allocation2 + $0x608] sm:$0xff]  ;;  %395 = vmatpush.msra.mxu1 %v289_v26  ;;  %435 = vmatpush.msra.mxu3 %v290_v27  ;;  %v179_v14 = vld [vmem:[#allocation2 + $0x2d0] sm:$0xff] }
  0x1f   :  { %v145_v32 = vld [vmem:[#allocation2 + $0x1c0] sm:$0xff]  ;;  %v146_v33 = vld [vmem:[#allocation2 + $0x1c8] sm:$0xff]  ;;  %376 = vmatpush.msra.mxu0 %v153_v28  ;;  %416 = vmatpush.msra.mxu2 %v154_v29  ;;  %v315_v15 = vld [vmem:[#allocation2 + $0x710] sm:$0xff] }
  0x20   :  { %v273_v34 = vld [vmem:[#allocation2 + $0x5c0] sm:$0xff]  ;;  %v274_v35 = vld [vmem:[#allocation2 + $0x5c8] sm:$0xff]  ;;  %396 = vmatpush.msra.mxu1 %v281_v30  ;;  %436 = vmatpush.msra.mxu3 %v282_v31  ;;  %v180_v16 = vld [vmem:[#allocation2 + $0x2d8] sm:$0xff] }
  0x21   :  { %v137_v36 = vld [vmem:[#allocation2 + $0x180] sm:$0xff]  ;;  %v138_v37 = vld [vmem:[#allocation2 + $0x188] sm:$0xff]  ;;  %377 = vmatpush.msra.mxu0 %v145_v32  ;;  %417 = vmatpush.msra.mxu2 %v146_v33  ;;  %v316_v17 = vld [vmem:[#allocation2 + $0x718] sm:$0xff] }
  0x22   :  { %v265_v38 = vld [vmem:[#allocation2 + $0x580] sm:$0xff]  ;;  %v266_v39 = vld [vmem:[#allocation2 + $0x588] sm:$0xff]  ;;  %397 = vmatpush.msra.mxu1 %v273_v34  ;;  %437 = vmatpush.msra.mxu3 %v274_v35  ;;  %v171_v18 = vld [vmem:[#allocation2 + $0x290] sm:$0xff] }
  0x23   :  { %v129_v40 = vld [vmem:[#allocation2 + $0x140] sm:$0xff]  ;;  %v130_v41 = vld [vmem:[#allocation2 + $0x148] sm:$0xff]  ;;  %378 = vmatpush.msra.mxu0 %v137_v36  ;;  %418 = vmatpush.msra.mxu2 %v138_v37  ;;  %v307_v19 = vld [vmem:[#allocation2 + $0x6d0] sm:$0xff] }
  0x24   :  { %v257_v42 = vld [vmem:[#allocation2 + $0x540] sm:$0xff]  ;;  %v258_v43 = vld [vmem:[#allocation2 + $0x548] sm:$0xff]  ;;  %398 = vmatpush.msra.mxu1 %v265_v38  ;;  %438 = vmatpush.msra.mxu3 %v266_v39  ;;  %v172_v20 = vld [vmem:[#allocation2 + $0x298] sm:$0xff] }
  0x25   :  { %v121_v44 = vld [vmem:[#allocation2 + $0x100] sm:$0xff]  ;;  %v122_v45 = vld [vmem:[#allocation2 + $0x108] sm:$0xff]  ;;  %379 = vmatpush.msra.mxu0 %v129_v40  ;;  %419 = vmatpush.msra.mxu2 %v130_v41  ;;  %v308_v21 = vld [vmem:[#allocation2 + $0x6d8] sm:$0xff] }
  0x26   :  { %v249_v46 = vld [vmem:[#allocation2 + $0x500] sm:$0xff]  ;;  %v250_v47 = vld [vmem:[#allocation2 + $0x508] sm:$0xff]  ;;  %399 = vmatpush.msra.mxu1 %v257_v42  ;;  %439 = vmatpush.msra.mxu3 %v258_v43  ;;  %v163_v22 = vld [vmem:[#allocation2 + $0x250] sm:$0xff] }
  0x27   :  { %v113_v48 = vld [vmem:[#allocation2 + $0xc0] sm:$0xff]  ;;  %v114_v49 = vld [vmem:[#allocation2 + $0xc8] sm:$0xff]  ;;  %380 = vmatpush.msra.mxu0 %v121_v44  ;;  %420 = vmatpush.msra.mxu2 %v122_v45  ;;  %v299_v23 = vld [vmem:[#allocation2 + $0x690] sm:$0xff] }
  0x28   :  { %v241_v50 = vld [vmem:[#allocation2 + $0x4c0] sm:$0xff]  ;;  %v242_v51 = vld [vmem:[#allocation2 + $0x4c8] sm:$0xff]  ;;  %400 = vmatpush.msra.mxu1 %v249_v46  ;;  %440 = vmatpush.msra.mxu3 %v250_v47  ;;  %v164_v24 = vld [vmem:[#allocation2 + $0x258] sm:$0xff] }
  0x29   :  { %v105_v52 = vld [vmem:[#allocation2 + $0x80] sm:$0xff]  ;;  %v106_v53 = vld [vmem:[#allocation2 + $0x88] sm:$0xff]  ;;  %381 = vmatpush.msra.mxu0 %v113_v48  ;;  %421 = vmatpush.msra.mxu2 %v114_v49  ;;  %v300_v25 = vld [vmem:[#allocation2 + $0x698] sm:$0xff] }
  0x2a   :  { %v233_v54 = vld [vmem:[#allocation2 + $0x480] sm:$0xff]  ;;  %v234_v55 = vld [vmem:[#allocation2 + $0x488] sm:$0xff]  ;;  %401 = vmatpush.msra.mxu1 %v241_v50  ;;  %441 = vmatpush.msra.mxu3 %v242_v51  ;;  %v88_v26 = vld [vmem:[%s2173_s0] sm:$0xf] }
  0x2b   :  { %v97_v56 = vld [vmem:[#allocation2 + $0x40] sm:$0xff]  ;;  %v98_v57 = vld [vmem:[#allocation2 + $0x48] sm:$0xff]  ;;  %382 = vmatpush.msra.mxu0 %v105_v52  ;;  %422 = vmatpush.msra.mxu2 %v106_v53  ;;  %v155_v27 = vld [vmem:[#allocation2 + $0x210] sm:$0xff]  ;;  %364 = vst [vmem:[#allocation1] ss:$4 sm:$0xff] %v88_v26 }
  0x2c   :  { %v225_v58 = vld [vmem:[#allocation2 + $0x440] sm:$0xff]  ;;  %v226_v59 = vld [vmem:[#allocation2 + $0x448] sm:$0xff]  ;;  %402 = vmatpush.msra.mxu1 %v233_v54  ;;  %442 = vmatpush.msra.mxu3 %v234_v55  ;;  %v291_v28 = vld [vmem:[#allocation2 + $0x650] sm:$0xff] }
  0x2d   :  { %v89_v60 = vld [vmem:[#allocation2] sm:$0xff]  ;;  %v90_v61 = vld [vmem:[#allocation2 + $0x8] sm:$0xff]  ;;  %383 = vmatpush.msra.mxu0 %v97_v56  ;;  %423 = vmatpush.msra.mxu2 %v98_v57  ;;  %v156_v29 = vld [vmem:[#allocation2 + $0x218] sm:$0xff] }
  0x2e   :  { %403 = vmatpush.msra.mxu1 %v225_v58  ;;  %443 = vmatpush.msra.mxu3 %v226_v59  ;;  %v217_v0 = vld [vmem:[#allocation2 + $0x400] sm:$0xff]  ;;  %v218_v1 = vld [vmem:[#allocation2 + $0x408] sm:$0xff]  ;;  %v292_v30 = vld [vmem:[#allocation2 + $0x658] sm:$0xff] }
  0x2f   :  { %384 = vmatpush.msra.mxu0 %v89_v60  ;;  %424 = vmatpush.msra.mxu2 %v90_v61  ;;  %v147_v31 = vld [vmem:[#allocation2 + $0x1d0] sm:$0xff]  ;;  %v148_v33 = vld [vmem:[#allocation2 + $0x1d8] sm:$0xff]  ;;  %v301_v26 = vld [vmem:[#allocation2 + $0x6a0] sm:$0xff] }
  0x30   :  { %404 = vmatpush.msra.mxu1 %v217_v0  ;;  %444 = vmatpush.msra.mxu3 %v218_v1  ;;  %v283_v32 = vld [vmem:[#allocation2 + $0x610] sm:$0xff]  ;;  %v284_v34 = vld [vmem:[#allocation2 + $0x618] sm:$0xff]  ;;  %v213_v0 = vld [vmem:[#allocation2 + $0x3e0] sm:$0xff] }
  0x31   :  { %449 = vmatpush.msrb.mxu0 %v211_v62  ;;  %489 = vmatpush.msrb.mxu2 %v212_v63  ;;  %v139_v35 = vld [vmem:[#allocation2 + $0x190] sm:$0xff]  ;;  %v140_v37 = vld [vmem:[#allocation2 + $0x198] sm:$0xff]  ;;  %v214_v1 = vld [vmem:[#allocation2 + $0x3e8] sm:$0xff] }
  0x32   :  { %469 = vmatpush.msrb.mxu1 %v339_v3  ;;  %509 = vmatpush.msrb.mxu3 %v340_v5  ;;  %v275_v36 = vld [vmem:[#allocation2 + $0x5d0] sm:$0xff]  ;;  %v276_v38 = vld [vmem:[#allocation2 + $0x5d8] sm:$0xff]  ;;  %v205_v5 = vld [vmem:[#allocation2 + $0x3a0] sm:$0xff] }
  0x33   :  { %450 = vmatpush.msrb.mxu0 %v203_v2  ;;  %490 = vmatpush.msrb.mxu2 %v204_v4  ;;  %v131_v39 = vld [vmem:[#allocation2 + $0x150] sm:$0xff]  ;;  %v132_v41 = vld [vmem:[#allocation2 + $0x158] sm:$0xff]  ;;  %v1972_v4 = vld.sshfl [vmem:[#allocation1 + $0x8] sm:$0xff pattern:$0x73625140] }
  0x34   :  { %470 = vmatpush.msrb.mxu1 %v331_v7  ;;  %510 = vmatpush.msrb.mxu3 %v332_v9  ;;  %v267_v40 = vld [vmem:[#allocation2 + $0x590] sm:$0xff]  ;;  %v268_v42 = vld [vmem:[#allocation2 + $0x598] sm:$0xff]  ;;  %v206_v7 = vld [vmem:[#allocation2 + $0x3a8] sm:$0xff] }
  0x35   :  { %451 = vmatpush.msrb.mxu0 %v195_v6  ;;  %491 = vmatpush.msrb.mxu2 %v196_v8  ;;  %v123_v43 = vld [vmem:[#allocation2 + $0x110] sm:$0xff]  ;;  %v124_v45 = vld [vmem:[#allocation2 + $0x118] sm:$0xff]  ;;  %v341_v6 = vld [vmem:[#allocation2 + $0x7e0] sm:$0xff] }
  0x36   :  { %471 = vmatpush.msrb.mxu1 %v323_v11  ;;  %511 = vmatpush.msrb.mxu3 %v324_v13  ;;  %v259_v44 = vld [vmem:[#allocation2 + $0x550] sm:$0xff]  ;;  %v260_v46 = vld [vmem:[#allocation2 + $0x558] sm:$0xff]  ;;  %v342_v8 = vld [vmem:[#allocation2 + $0x7e8] sm:$0xff] }
  0x37   :  { %452 = vmatpush.msrb.mxu0 %v187_v10  ;;  %492 = vmatpush.msrb.mxu2 %v188_v12  ;;  %v115_v47 = vld [vmem:[#allocation2 + $0xd0] sm:$0xff]  ;;  %v116_v49 = vld [vmem:[#allocation2 + $0xd8] sm:$0xff]  ;;  %v197_v9 = vld [vmem:[#allocation2 + $0x360] sm:$0xff] }
  0x38   :  { %472 = vmatpush.msrb.mxu1 %v315_v15  ;;  %512 = vmatpush.msrb.mxu3 %v316_v17  ;;  %v251_v48 = vld [vmem:[#allocation2 + $0x510] sm:$0xff]  ;;  %v252_v50 = vld [vmem:[#allocation2 + $0x518] sm:$0xff]  ;;  %v333_v10 = vld [vmem:[#allocation2 + $0x7a0] sm:$0xff] }
  0x39   :  { %453 = vmatpush.msrb.mxu0 %v179_v14  ;;  %493 = vmatpush.msrb.mxu2 %v180_v16  ;;  %v107_v51 = vld [vmem:[#allocation2 + $0x90] sm:$0xff]  ;;  %v108_v53 = vld [vmem:[#allocation2 + $0x98] sm:$0xff]  ;;  %v198_v11 = vld [vmem:[#allocation2 + $0x368] sm:$0xff] }
  0x3a   :  { %473 = vmatpush.msrb.mxu1 %v307_v19  ;;  %513 = vmatpush.msrb.mxu3 %v308_v21  ;;  %v243_v52 = vld [vmem:[#allocation2 + $0x4d0] sm:$0xff]  ;;  %v244_v54 = vld [vmem:[#allocation2 + $0x4d8] sm:$0xff]  ;;  %v334_v12 = vld [vmem:[#allocation2 + $0x7a8] sm:$0xff] }
  0x3b   :  { %454 = vmatpush.msrb.mxu0 %v171_v18  ;;  %494 = vmatpush.msrb.mxu2 %v172_v20  ;;  %v99_v55 = vld [vmem:[#allocation2 + $0x50] sm:$0xff]  ;;  %v100_v57 = vld [vmem:[#allocation2 + $0x58] sm:$0xff]  ;;  %v189_v13 = vld [vmem:[#allocation2 + $0x320] sm:$0xff] }
  0x3c   :  { %474 = vmatpush.msrb.mxu1 %v299_v23  ;;  %514 = vmatpush.msrb.mxu3 %v300_v25  ;;  %v235_v56 = vld [vmem:[#allocation2 + $0x490] sm:$0xff]  ;;  %v236_v58 = vld [vmem:[#allocation2 + $0x498] sm:$0xff]  ;;  %v325_v14 = vld [vmem:[#allocation2 + $0x760] sm:$0xff] }
  0x3d   :  { %455 = vmatpush.msrb.mxu0 %v163_v22  ;;  %495 = vmatpush.msrb.mxu2 %v164_v24  ;;  %v91_v59 = vld [vmem:[#allocation2 + $0x10] sm:$0xff]  ;;  %v92_v61 = vld [vmem:[#allocation2 + $0x18] sm:$0xff]  ;;  %v190_v15 = vld [vmem:[#allocation2 + $0x328] sm:$0xff] }
  0x3e   :  { %475 = vmatpush.msrb.mxu1 %v291_v28  ;;  %515 = vmatpush.msrb.mxu3 %v292_v30  ;;  %v227_v60 = vld [vmem:[#allocation2 + $0x450] sm:$0xff]  ;;  %v228_v62 = vld [vmem:[#allocation2 + $0x458] sm:$0xff]  ;;  %v326_v16 = vld [vmem:[#allocation2 + $0x768] sm:$0xff] }
  0x3f   :  { %456 = vmatpush.msrb.mxu0 %v155_v27  ;;  %496 = vmatpush.msrb.mxu2 %v156_v29  ;;  %v1968_v63 = vld.sshfl [vmem:[#allocation1] sm:$0xff pattern:$0x73625140]  ;;  %v219_v2 = vld [vmem:[#allocation2 + $0x410] sm:$0xff]  ;;  %v181_v17 = vld [vmem:[#allocation2 + $0x2e0] sm:$0xff] }
  0x40   :  { %476 = vmatpush.msrb.mxu1 %v283_v32  ;;  %516 = vmatpush.msrb.mxu3 %v284_v34  ;;  %v220_v3 = vld [vmem:[#allocation2 + $0x418] sm:$0xff]  ;;  %v317_v18 = vld [vmem:[#allocation2 + $0x720] sm:$0xff]  ;;  %v182_v19 = vld [vmem:[#allocation2 + $0x2e8] sm:$0xff] }
  0x41   :  { %457 = vmatpush.msrb.mxu0 %v147_v31  ;;  %497 = vmatpush.msrb.mxu2 %v148_v33  ;;  %v318_v20 = vld [vmem:[#allocation2 + $0x728] sm:$0xff]  ;;  %v173_v21 = vld [vmem:[#allocation2 + $0x2a0] sm:$0xff] }
  0x42   :  { %477 = vmatpush.msrb.mxu1 %v275_v36  ;;  %517 = vmatpush.msrb.mxu3 %v276_v38  ;;  %v309_v22 = vld [vmem:[#allocation2 + $0x6e0] sm:$0xff]  ;;  %v174_v23 = vld [vmem:[#allocation2 + $0x2a8] sm:$0xff] }
  0x43   :  { %458 = vmatpush.msrb.mxu0 %v139_v35  ;;  %498 = vmatpush.msrb.mxu2 %v140_v37  ;;  %v310_v24 = vld [vmem:[#allocation2 + $0x6e8] sm:$0xff]  ;;  %v165_v25 = vld [vmem:[#allocation2 + $0x260] sm:$0xff] }
  0x44   :  { %478 = vmatpush.msrb.mxu1 %v267_v40  ;;  %518 = vmatpush.msrb.mxu3 %v268_v42  ;;  %v166_v27 = vld [vmem:[#allocation2 + $0x268] sm:$0xff]  ;;  %v157_v29 = vld [vmem:[#allocation2 + $0x220] sm:$0xff] }
  0x45   :  { %459 = vmatpush.msrb.mxu0 %v131_v39  ;;  %499 = vmatpush.msrb.mxu2 %v132_v41  ;;  %v302_v28 = vld [vmem:[#allocation2 + $0x6a8] sm:$0xff]  ;;  %v293_v30 = vld [vmem:[#allocation2 + $0x660] sm:$0xff] }
  0x46   :  { %479 = vmatpush.msrb.mxu1 %v259_v44  ;;  %519 = vmatpush.msrb.mxu3 %v260_v46  ;;  %v158_v31 = vld [vmem:[#allocation2 + $0x228] sm:$0xff]  ;;  %v149_v33 = vld [vmem:[#allocation2 + $0x1e0] sm:$0xff] }
  0x47   :  { %460 = vmatpush.msrb.mxu0 %v123_v43  ;;  %500 = vmatpush.msrb.mxu2 %v124_v45  ;;  %v294_v32 = vld [vmem:[#allocation2 + $0x668] sm:$0xff]  ;;  %v285_v34 = vld [vmem:[#allocation2 + $0x620] sm:$0xff] }
  0x48   :  { %480 = vmatpush.msrb.mxu1 %v251_v48  ;;  %520 = vmatpush.msrb.mxu3 %v252_v50  ;;  %v150_v35 = vld [vmem:[#allocation2 + $0x1e8] sm:$0xff]  ;;  %v141_v37 = vld [vmem:[#allocation2 + $0x1a0] sm:$0xff] }
  0x49   :  { %461 = vmatpush.msrb.mxu0 %v115_v47  ;;  %501 = vmatpush.msrb.mxu2 %v116_v49  ;;  %v286_v36 = vld [vmem:[#allocation2 + $0x628] sm:$0xff]  ;;  %v277_v38 = vld [vmem:[#allocation2 + $0x5e0] sm:$0xff] }
  0x4a   :  { %481 = vmatpush.msrb.mxu1 %v243_v52  ;;  %521 = vmatpush.msrb.mxu3 %v244_v54  ;;  %v142_v39 = vld [vmem:[#allocation2 + $0x1a8] sm:$0xff]  ;;  %v133_v41 = vld [vmem:[#allocation2 + $0x160] sm:$0xff] }
  0x4b   :  { %462 = vmatpush.msrb.mxu0 %v107_v51  ;;  %502 = vmatpush.msrb.mxu2 %v108_v53  ;;  %v278_v40 = vld [vmem:[#allocation2 + $0x5e8] sm:$0xff]  ;;  %v269_v42 = vld [vmem:[#allocation2 + $0x5a0] sm:$0xff] }
  0x4c   :  { %482 = vmatpush.msrb.mxu1 %v235_v56  ;;  %522 = vmatpush.msrb.mxu3 %v236_v58  ;;  %v134_v43 = vld [vmem:[#allocation2 + $0x168] sm:$0xff]  ;;  %v125_v45 = vld [vmem:[#allocation2 + $0x120] sm:$0xff] }
  0x4d   :  { %463 = vmatpush.msrb.mxu0 %v99_v55  ;;  %503 = vmatpush.msrb.mxu2 %v100_v57  ;;  %v270_v44 = vld [vmem:[#allocation2 + $0x5a8] sm:$0xff]  ;;  %v261_v46 = vld [vmem:[#allocation2 + $0x560] sm:$0xff] }
  0x4e   :  { %483 = vmatpush.msrb.mxu1 %v227_v60  ;;  %523 = vmatpush.msrb.mxu3 %v228_v62  ;;  %v126_v47 = vld [vmem:[#allocation2 + $0x128] sm:$0xff]  ;;  %v117_v49 = vld [vmem:[#allocation2 + $0xe0] sm:$0xff] }
  0x4f   :  { %464 = vmatpush.msrb.mxu0 %v91_v59  ;;  %504 = vmatpush.msrb.mxu2 %v92_v61  ;;  %v262_v48 = vld [vmem:[#allocation2 + $0x568] sm:$0xff]  ;;  %v253_v50 = vld [vmem:[#allocation2 + $0x520] sm:$0xff] }
  0x50   :  { %385 = vmatmul.f32.vlgmr.msra.gmra.mxu0 %v1968_v63  ;;  %425 = vmatmul.f32.vlgmr.msra.gmra.mxu2 %v1968_v63  ;;  %v118_v51 = vld [vmem:[#allocation2 + $0xe8] sm:$0xff]  ;;  %v109_v53 = vld [vmem:[#allocation2 + $0xa0] sm:$0xff] }
  0x51   :  { %529 = vmatpush.msra.mxu0 %v213_v0  ;;  %569 = vmatpush.msra.mxu2 %v214_v1  ;;  %v254_v52 = vld [vmem:[#allocation2 + $0x528] sm:$0xff]  ;;  %v245_v54 = vld [vmem:[#allocation2 + $0x4e0] sm:$0xff] }
  0x52   :  { %484 = vmatpush.msrb.mxu1 %v219_v2  ;;  %524 = vmatpush.msrb.mxu3 %v220_v3  ;;  %v110_v55 = vld [vmem:[#allocation2 + $0xa8] sm:$0xff]  ;;  %v101_v57 = vld [vmem:[#allocation2 + $0x60] sm:$0xff]  ;;  %v215_v2 = vld [vmem:[#allocation2 + $0x3f0] sm:$0xff] }
  0x53   :  { %405 = vmatmul.f32.vlgmr.msra.gmra.mxu1 %v1972_v4  ;;  %445 = vmatmul.f32.vlgmr.msra.gmra.mxu3 %v1972_v4  ;;  %v246_v56 = vld [vmem:[#allocation2 + $0x4e8] sm:$0xff]  ;;  %v237_v58 = vld [vmem:[#allocation2 + $0x4a0] sm:$0xff]  ;;  %v216_v3 = vld [vmem:[#allocation2 + $0x3f8] sm:$0xff] }
  0x54   :  { %530 = vmatpush.msra.mxu0 %v205_v5  ;;  %549 = vmatpush.msra.mxu1 %v341_v6  ;;  %v102_v59 = vld [vmem:[#allocation2 + $0x68] sm:$0xff]  ;;  %v93_v61 = vld [vmem:[#allocation2 + $0x20] sm:$0xff] }
  0x55   :  { %570 = vmatpush.msra.mxu2 %v206_v7  ;;  %589 = vmatpush.msra.mxu3 %v342_v8  ;;  %v238_v60 = vld [vmem:[#allocation2 + $0x4a8] sm:$0xff]  ;;  %v229_v62 = vld [vmem:[#allocation2 + $0x460] sm:$0xff]  ;;  %v207_v7 = vld [vmem:[#allocation2 + $0x3b0] sm:$0xff] }
  0x56   :  { %531 = vmatpush.msra.mxu0 %v197_v9  ;;  %550 = vmatpush.msra.mxu1 %v333_v10  ;;  %v94_v0 = vld [vmem:[#allocation2 + $0x28] sm:$0xff]  ;;  %v221_v5 = vld [vmem:[#allocation2 + $0x420] sm:$0xff]  ;;  %v343_v8 = vld [vmem:[#allocation2 + $0x7f0] sm:$0xff] }
  0x57   :  { %571 = vmatpush.msra.mxu2 %v198_v11  ;;  %590 = vmatpush.msra.mxu3 %v334_v12  ;;  %v230_v1 = vld [vmem:[#allocation2 + $0x468] sm:$0xff]  ;;  %v208_v9 = vld [vmem:[#allocation2 + $0x3b8] sm:$0xff]  ;;  %v199_v11 = vld [vmem:[#allocation2 + $0x370] sm:$0xff] }
  0x58   :  { %532 = vmatpush.msra.mxu0 %v189_v13  ;;  %551 = vmatpush.msra.mxu1 %v325_v14  ;;  %v222_v6 = vld [vmem:[#allocation2 + $0x428] sm:$0xff]  ;;  %v344_v10 = vld [vmem:[#allocation2 + $0x7f8] sm:$0xff]  ;;  %v335_v12 = vld [vmem:[#allocation2 + $0x7b0] sm:$0xff] }
  0x59   :  { %572 = vmatpush.msra.mxu2 %v190_v15  ;;  %591 = vmatpush.msra.mxu3 %v326_v16  ;;  %v200_v13 = vld [vmem:[#allocation2 + $0x378] sm:$0xff]  ;;  %v191_v15 = vld [vmem:[#allocation2 + $0x330] sm:$0xff] }
  0x5a   :  { %533 = vmatpush.msra.mxu0 %v181_v17  ;;  %552 = vmatpush.msra.mxu1 %v317_v18  ;;  %v336_v14 = vld [vmem:[#allocation2 + $0x7b8] sm:$0xff]  ;;  %v327_v16 = vld [vmem:[#allocation2 + $0x770] sm:$0xff] }
  0x5b   :  { %573 = vmatpush.msra.mxu2 %v182_v19  ;;  %592 = vmatpush.msra.mxu3 %v318_v20  ;;  %v192_v17 = vld [vmem:[#allocation2 + $0x338] sm:$0xff]  ;;  %v183_v19 = vld [vmem:[#allocation2 + $0x2f0] sm:$0xff] }
  0x5c   :  { %534 = vmatpush.msra.mxu0 %v173_v21  ;;  %553 = vmatpush.msra.mxu1 %v309_v22  ;;  %v328_v18 = vld [vmem:[#allocation2 + $0x778] sm:$0xff]  ;;  %v319_v20 = vld [vmem:[#allocation2 + $0x730] sm:$0xff] }
  0x5d   :  { %574 = vmatpush.msra.mxu2 %v174_v23  ;;  %593 = vmatpush.msra.mxu3 %v310_v24  ;;  %v184_v21 = vld [vmem:[#allocation2 + $0x2f8] sm:$0xff]  ;;  %v175_v23 = vld [vmem:[#allocation2 + $0x2b0] sm:$0xff] }
  0x5e   :  { %535 = vmatpush.msra.mxu0 %v165_v25  ;;  %554 = vmatpush.msra.mxu1 %v301_v26  ;;  %v320_v22 = vld [vmem:[#allocation2 + $0x738] sm:$0xff]  ;;  %v311_v24 = vld [vmem:[#allocation2 + $0x6f0] sm:$0xff] }
  0x5f   :  { %575 = vmatpush.msra.mxu2 %v166_v27  ;;  %594 = vmatpush.msra.mxu3 %v302_v28  ;;  %v176_v25 = vld [vmem:[#allocation2 + $0x2b8] sm:$0xff]  ;;  %v167_v27 = vld [vmem:[#allocation2 + $0x270] sm:$0xff] }
  0x60   :  { %536 = vmatpush.msra.mxu0 %v157_v29  ;;  %555 = vmatpush.msra.mxu1 %v293_v30  ;;  %v312_v26 = vld [vmem:[#allocation2 + $0x6f8] sm:$0xff]  ;;  %v303_v28 = vld [vmem:[#allocation2 + $0x6b0] sm:$0xff] }
  0x61   :  { %576 = vmatpush.msra.mxu2 %v158_v31  ;;  %595 = vmatpush.msra.mxu3 %v294_v32  ;;  %v168_v29 = vld [vmem:[#allocation2 + $0x278] sm:$0xff]  ;;  %v159_v31 = vld [vmem:[#allocation2 + $0x230] sm:$0xff] }
  0x62   :  { %537 = vmatpush.msra.mxu0 %v149_v33  ;;  %556 = vmatpush.msra.mxu1 %v285_v34  ;;  %v304_v30 = vld [vmem:[#allocation2 + $0x6b8] sm:$0xff]  ;;  %v295_v32 = vld [vmem:[#allocation2 + $0x670] sm:$0xff] }
  0x63   :  { %577 = vmatpush.msra.mxu2 %v150_v35  ;;  %596 = vmatpush.msra.mxu3 %v286_v36  ;;  %v160_v33 = vld [vmem:[#allocation2 + $0x238] sm:$0xff]  ;;  %v151_v35 = vld [vmem:[#allocation2 + $0x1f0] sm:$0xff] }
  0x64   :  { %538 = vmatpush.msra.mxu0 %v141_v37  ;;  %557 = vmatpush.msra.mxu1 %v277_v38  ;;  %v296_v34 = vld [vmem:[#allocation2 + $0x678] sm:$0xff]  ;;  %v287_v36 = vld [vmem:[#allocation2 + $0x630] sm:$0xff] }
  0x65   :  { %578 = vmatpush.msra.mxu2 %v142_v39  ;;  %597 = vmatpush.msra.mxu3 %v278_v40  ;;  %v152_v37 = vld [vmem:[#allocation2 + $0x1f8] sm:$0xff]  ;;  %v143_v39 = vld [vmem:[#allocation2 + $0x1b0] sm:$0xff] }
  0x66   :  { %539 = vmatpush.msra.mxu0 %v133_v41  ;;  %558 = vmatpush.msra.mxu1 %v269_v42  ;;  %v288_v38 = vld [vmem:[#allocation2 + $0x638] sm:$0xff]  ;;  %v279_v40 = vld [vmem:[#allocation2 + $0x5f0] sm:$0xff] }
  0x67   :  { %579 = vmatpush.msra.mxu2 %v134_v43  ;;  %598 = vmatpush.msra.mxu3 %v270_v44  ;;  %v144_v41 = vld [vmem:[#allocation2 + $0x1b8] sm:$0xff]  ;;  %v135_v43 = vld [vmem:[#allocation2 + $0x170] sm:$0xff] }
  0x68   :  { %540 = vmatpush.msra.mxu0 %v125_v45  ;;  %559 = vmatpush.msra.mxu1 %v261_v46  ;;  %v280_v42 = vld [vmem:[#allocation2 + $0x5f8] sm:$0xff]  ;;  %v271_v44 = vld [vmem:[#allocation2 + $0x5b0] sm:$0xff] }
  0x69   :  { %580 = vmatpush.msra.mxu2 %v126_v47  ;;  %599 = vmatpush.msra.mxu3 %v262_v48  ;;  %v136_v45 = vld [vmem:[#allocation2 + $0x178] sm:$0xff]  ;;  %v127_v47 = vld [vmem:[#allocation2 + $0x130] sm:$0xff] }
  0x6a   :  { %465 = vmatmul.f32.vlgmr.msrb.gmra.mxu0 %v1968_v63  ;;  %505 = vmatmul.f32.vlgmr.msrb.gmra.mxu2 %v1968_v63  ;;  %v272_v46 = vld [vmem:[#allocation2 + $0x5b8] sm:$0xff]  ;;  %v263_v48 = vld [vmem:[#allocation2 + $0x570] sm:$0xff] }
  0x6b   :  { %541 = vmatpush.msra.mxu0 %v117_v49  ;;  %560 = vmatpush.msra.mxu1 %v253_v50  ;;  %v128_v49 = vld [vmem:[#allocation2 + $0x138] sm:$0xff] }
  0x6c   :  { %581 = vmatpush.msra.mxu2 %v118_v51  ;;  %600 = vmatpush.msra.mxu3 %v254_v52  ;;  %v264_v50 = vld [vmem:[#allocation2 + $0x578] sm:$0xff]  ;;  %v119_v51 = vld [vmem:[#allocation2 + $0xf0] sm:$0xff] }
  0x6d   :  { %485 = vmatmul.f32.vlgmr.msrb.gmra.mxu1 %v1972_v4  ;;  %525 = vmatmul.f32.vlgmr.msrb.gmra.mxu3 %v1972_v4  ;;  %v255_v52 = vld [vmem:[#allocation2 + $0x530] sm:$0xff] }
  0x6e   :  { %542 = vmatpush.msra.mxu0 %v109_v53  ;;  %561 = vmatpush.msra.mxu1 %v245_v54  ;;  %v120_v53 = vld [vmem:[#allocation2 + $0xf8] sm:$0xff] }
  0x6f   :  { %582 = vmatpush.msra.mxu2 %v110_v55  ;;  %601 = vmatpush.msra.mxu3 %v246_v56  ;;  %v256_v54 = vld [vmem:[#allocation2 + $0x538] sm:$0xff]  ;;  %v111_v55 = vld [vmem:[#allocation2 + $0xb0] sm:$0xff] }
  0x70   :  { %543 = vmatpush.msra.mxu0 %v101_v57  ;;  %562 = vmatpush.msra.mxu1 %v237_v58  ;;  %v247_v56 = vld [vmem:[#allocation2 + $0x4f0] sm:$0xff]  ;;  %v112_v57 = vld [vmem:[#allocation2 + $0xb8] sm:$0xff] }
  0x71   :  { %583 = vmatpush.msra.mxu2 %v102_v59  ;;  %602 = vmatpush.msra.mxu3 %v238_v60  ;;  %v248_v58 = vld [vmem:[#allocation2 + $0x4f8] sm:$0xff]  ;;  %v103_v59 = vld [vmem:[#allocation2 + $0x70] sm:$0xff] }
  0x72   :  { %544 = vmatpush.msra.mxu0 %v93_v61  ;;  %563 = vmatpush.msra.mxu1 %v229_v62  ;;  %v239_v60 = vld [vmem:[#allocation2 + $0x4b0] sm:$0xff]  ;;  %v104_v61 = vld [vmem:[#allocation2 + $0x78] sm:$0xff] }
  0x73   :  { %584 = vmatpush.msra.mxu2 %v94_v0  ;;  %603 = vmatpush.msra.mxu3 %v230_v1  ;;  %v240_v62 = vld [vmem:[#allocation2 + $0x4b8] sm:$0xff]  ;;  %v95_v0 = vld [vmem:[#allocation2 + $0x30] sm:$0xff] }
  0x74   :  { %545 = vmatmul.f32.vlgmr.msra.gmra.mxu0 %v1968_v63  ;;  %585 = vmatmul.f32.vlgmr.msra.gmra.mxu2 %v1968_v63  ;;  %v231_v1 = vld [vmem:[#allocation2 + $0x470] sm:$0xff] }
  0x75   :  { %609 = vmatpush.msrb.mxu0 %v215_v2  ;;  %649 = vmatpush.msrb.mxu2 %v216_v3  ;;  %v96_v2 = vld [vmem:[#allocation2 + $0x38] sm:$0xff] }
  0x76   :  { %564 = vmatpush.msra.mxu1 %v221_v5  ;;  %604 = vmatpush.msra.mxu3 %v222_v6  ;;  %v232_v3 = vld [vmem:[#allocation2 + $0x478] sm:$0xff]  ;;  %v223_v5 = vld [vmem:[#allocation2 + $0x430] sm:$0xff] }
  0x77   :  { %565 = vmatmul.f32.vlgmr.msra.gmra.mxu1 %v1972_v4  ;;  %605 = vmatmul.f32.vlgmr.msra.gmra.mxu3 %v1972_v4  ;;  %v224_v6 = vld [vmem:[#allocation2 + $0x438] sm:$0xff] }
  0x78   :  { %610 = vmatpush.msrb.mxu0 %v207_v7  ;;  %629 = vmatpush.msrb.mxu1 %v343_v8  ;;  %v829_v7 = vld [vmem:[#allocation4 + $0x1e0] sm:$0xff] }
  0x79   :  { %650 = vmatpush.msrb.mxu2 %v208_v9  ;;  %669 = vmatpush.msrb.mxu3 %v344_v10  ;;  %v825_v8 = vld [vmem:[#allocation4 + $0x1c0] sm:$0xff] }
  0x7a   :  { %611 = vmatpush.msrb.mxu0 %v199_v11  ;;  %630 = vmatpush.msrb.mxu1 %v335_v12  ;;  %v821_v9 = vld [vmem:[#allocation4 + $0x1a0] sm:$0xff] }
  0x7b   :  { %651 = vmatpush.msrb.mxu2 %v200_v13  ;;  %670 = vmatpush.msrb.mxu3 %v336_v14  ;;  %v817_v10 = vld [vmem:[#allocation4 + $0x180] sm:$0xff] }
  0x7c   :  { %612 = vmatpush.msrb.mxu0 %v191_v15  ;;  %631 = vmatpush.msrb.mxu1 %v327_v16  ;;  %v893_v11 = vld [vmem:[#allocation4 + $0x3e0] sm:$0xff] }
  0x7d   :  { %652 = vmatpush.msrb.mxu2 %v192_v17  ;;  %671 = vmatpush.msrb.mxu3 %v328_v18  ;;  %v889_v12 = vld [vmem:[#allocation4 + $0x3c0] sm:$0xff] }
  0x7e   :  { %613 = vmatpush.msrb.mxu0 %v183_v19  ;;  %632 = vmatpush.msrb.mxu1 %v319_v20  ;;  %v813_v13 = vld [vmem:[#allocation4 + $0x160] sm:$0xff] }
  0x7f   :  { %653 = vmatpush.msrb.mxu2 %v184_v21  ;;  %672 = vmatpush.msrb.mxu3 %v320_v22  ;;  %v885_v14 = vld [vmem:[#allocation4 + $0x3a0] sm:$0xff] }
  0x80   :  { %614 = vmatpush.msrb.mxu0 %v175_v23  ;;  %633 = vmatpush.msrb.mxu1 %v311_v24  ;;  %v881_v15 = vld [vmem:[#allocation4 + $0x380] sm:$0xff] }
  0x81   :  { %654 = vmatpush.msrb.mxu2 %v176_v25  ;;  %673 = vmatpush.msrb.mxu3 %v312_v26  ;;  %v805_v16 = vld [vmem:[#allocation4 + $0x120] sm:$0xff] }
  0x82   :  { %615 = vmatpush.msrb.mxu0 %v167_v27  ;;  %634 = vmatpush.msrb.mxu1 %v303_v28  ;;  %v801_v17 = vld [vmem:[#allocation4 + $0x100] sm:$0xff] }
  0x83   :  { %655 = vmatpush.msrb.mxu2 %v168_v29  ;;  %674 = vmatpush.msrb.mxu3 %v304_v30  ;;  %v873_v18 = vld [vmem:[#allocation4 + $0x340] sm:$0xff] }
  0x84   :  { %616 = vmatpush.msrb.mxu0 %v159_v31  ;;  %635 = vmatpush.msrb.mxu1 %v295_v32  ;;  %v797_v19 = vld [vmem:[#allocation4 + $0xe0] sm:$0xff] }
  0x85   :  { %656 = vmatpush.msrb.mxu2 %v160_v33  ;;  %675 = vmatpush.msrb.mxu3 %v296_v34  ;;  %v869_v20 = vld [vmem:[#allocation4 + $0x320] sm:$0xff] }
  0x86   :  { %617 = vmatpush.msrb.mxu0 %v151_v35  ;;  %636 = vmatpush.msrb.mxu1 %v287_v36  ;;  %v793_v21 = vld [vmem:[#allocation4 + $0xc0] sm:$0xff]  ;;  %v830_v35 = vld [vmem:[#allocation4 + $0x1e8] sm:$0xff] }
  0x87   :  { %657 = vmatpush.msrb.mxu2 %v152_v37  ;;  %676 = vmatpush.msrb.mxu3 %v288_v38  ;;  %v789_v22 = vld [vmem:[#allocation4 + $0xa0] sm:$0xff]  ;;  %v826_v38 = vld [vmem:[#allocation4 + $0x1c8] sm:$0xff] }
  0x88   :  { %618 = vmatpush.msrb.mxu0 %v143_v39  ;;  %637 = vmatpush.msrb.mxu1 %v279_v40  ;;  %v865_v23 = vld [vmem:[#allocation4 + $0x300] sm:$0xff] }
  0x89   :  { %658 = vmatpush.msrb.mxu2 %v144_v41  ;;  %677 = vmatpush.msrb.mxu3 %v280_v42  ;;  %v785_v24 = vld [vmem:[#allocation4 + $0x80] sm:$0xff]  ;;  %v822_v41 = vld [vmem:[#allocation4 + $0x1a8] sm:$0xff] }
  0x8a   :  { %619 = vmatpush.msrb.mxu0 %v135_v43  ;;  %638 = vmatpush.msrb.mxu1 %v271_v44  ;;  %v861_v25 = vld [vmem:[#allocation4 + $0x2e0] sm:$0xff] }
  0x8b   :  { %659 = vmatpush.msrb.mxu2 %v136_v45  ;;  %678 = vmatpush.msrb.mxu3 %v272_v46  ;;  %v781_v26 = vld [vmem:[#allocation4 + $0x60] sm:$0xff]  ;;  %v818_v45 = vld [vmem:[#allocation4 + $0x188] sm:$0xff] }
  0x8c   :  { %620 = vmatpush.msrb.mxu0 %v127_v47  ;;  %639 = vmatpush.msrb.mxu1 %v263_v48  ;;  %v857_v27 = vld [vmem:[#allocation4 + $0x2c0] sm:$0xff]  ;;  %v894_v46 = vld [vmem:[#allocation4 + $0x3e8] sm:$0xff] }
  0x8d   :  { %660 = vmatpush.msrb.mxu2 %v128_v49  ;;  %679 = vmatpush.msrb.mxu3 %v264_v50  ;;  %v777_v28 = vld [vmem:[#allocation4 + $0x40] sm:$0xff]  ;;  %v814_v50 = vld [vmem:[#allocation4 + $0x168] sm:$0xff] }
  0x8e   :  { %621 = vmatpush.msrb.mxu0 %v119_v51  ;;  %640 = vmatpush.msrb.mxu1 %v255_v52  ;;  %v853_v29 = vld [vmem:[#allocation4 + $0x2a0] sm:$0xff]  ;;  %v890_v51 = vld [vmem:[#allocation4 + $0x3c8] sm:$0xff] }
  0x8f   :  { %661 = vmatpush.msrb.mxu2 %v120_v53  ;;  %680 = vmatpush.msrb.mxu3 %v256_v54  ;;  %v773_v30 = vld [vmem:[#allocation4 + $0x20] sm:$0xff]  ;;  %v810_v54 = vld [vmem:[#allocation4 + $0x148] sm:$0xff] }
  0x90   :  { %622 = vmatpush.msrb.mxu0 %v111_v55  ;;  %641 = vmatpush.msrb.mxu1 %v247_v56  ;;  %v849_v31 = vld [vmem:[#allocation4 + $0x280] sm:$0xff]  ;;  %v1993_v55 = vld [vmem:[%s2175_s2] sm:$0xff] }
  0x91   :  { %662 = vmatpush.msrb.mxu2 %v112_v57  ;;  %681 = vmatpush.msrb.mxu3 %v248_v58  ;;  %v769_v32 = vld [vmem:[#allocation4] sm:$0xff]  ;;  %v886_v57 = vld [vmem:[#allocation4 + $0x3a8] sm:$0xff] }
  0x92   :  { %623 = vmatpush.msrb.mxu0 %v103_v59  ;;  %642 = vmatpush.msrb.mxu1 %v239_v60  ;;  %v845_v33 = vld [vmem:[#allocation4 + $0x260] sm:$0xff]  ;;  %v806_v60 = vld [vmem:[#allocation4 + $0x128] sm:$0xff] }
  0x93   :  { %663 = vmatpush.msrb.mxu2 %v104_v61  ;;  %682 = vmatpush.msrb.mxu3 %v240_v62  ;;  %v957_v34 = vld [vmem:[#allocation4 + $0x5e0] sm:$0xff]  ;;  %v349_v61 = vperm.slane %v1993_v55, 2  ;;  %v882_v62 = vld [vmem:[#allocation4 + $0x388] sm:$0xff] }
  0x94   :  { %624 = vmatpush.msrb.mxu0 %v95_v0  ;;  %643 = vmatpush.msrb.mxu1 %v231_v1  ;;  %v841_v36 = vld [vmem:[#allocation4 + $0x240] sm:$0xff] }
  0x95   :  { %664 = vmatpush.msrb.mxu2 %v96_v2  ;;  %683 = vmatpush.msrb.mxu3 %v232_v3  ;;  %v953_v37 = vld [vmem:[#allocation4 + $0x5c0] sm:$0xff]  ;;  %v802_v3 = vld [vmem:[#allocation4 + $0x108] sm:$0xff] }
  0x96   :  { %625 = vmatmul.f32.vlgmr.msrb.gmra.mxu0 %v1968_v63  ;;  %665 = vmatmul.f32.vlgmr.msrb.gmra.mxu2 %v1968_v63  ;;  %v809_v63 = vld [vmem:[#allocation4 + $0x140] sm:$0xff] }
  0x97   :  { %644 = vmatpush.msrb.mxu1 %v223_v5  ;;  %684 = vmatpush.msrb.mxu3 %v224_v6  ;;  %v837_v39 = vld [vmem:[#allocation4 + $0x220] sm:$0xff]  ;;  %v878_v5 = vld [vmem:[#allocation4 + $0x368] sm:$0xff] }
  0x98   :  { %645 = vmatmul.f32.vlgmr.msrb.gmra.mxu1 %v1972_v4  ;;  %685 = vmatmul.f32.vlgmr.msrb.gmra.mxu3 %v1972_v4  ;;  %v877_v4 = vld [vmem:[#allocation4 + $0x360] sm:$0xff] }
  0x99   :  { %1035 = vmatpush.msra.mxu0 %v829_v7  ;;  %1055 = vmatpush.msra.mxu1 %v893_v11  ;;  %v949_v40 = vld [vmem:[#allocation4 + $0x5a0] sm:$0xff] }
  0x9a   :  { %1075 = vmatpush.msra.mxu2 %v957_v34  ;;  %v833_v42 = vld [vmem:[#allocation4 + $0x200] sm:$0xff] }
  0x9b   :  { %1036 = vmatpush.msra.mxu0 %v825_v8  ;;  %1056 = vmatpush.msra.mxu1 %v889_v12  ;;  %v945_v43 = vld [vmem:[#allocation4 + $0x580] sm:$0xff]  ;;  %v874_v12 = vld [vmem:[#allocation4 + $0x348] sm:$0xff] }
  0x9c   :  { %1076 = vmatpush.msra.mxu2 %v953_v37  ;;  %v1021_v44 = vld [vmem:[#allocation4 + $0x7e0] sm:$0xff] }
  0x9d   :  { %1037 = vmatpush.msra.mxu0 %v821_v9  ;;  %1057 = vmatpush.msra.mxu1 %v885_v14  ;;  %v941_v48 = vld [vmem:[#allocation4 + $0x560] sm:$0xff]  ;;  %v798_v9 = vld [vmem:[#allocation4 + $0xe8] sm:$0xff] }
  0x9e   :  { %1077 = vmatpush.msra.mxu2 %v949_v40  ;;  %1095 = vmatpush.msra.mxu3 %v1021_v44  ;;  %v1017_v49 = vld [vmem:[#allocation4 + $0x7c0] sm:$0xff]  ;;  %v854_v40 = vld [vmem:[#allocation4 + $0x2a8] sm:$0xff] }
  0x9f   :  { %1038 = vmatpush.msra.mxu0 %v817_v10  ;;  %1058 = vmatpush.msra.mxu1 %v881_v15  ;;  %v937_v52 = vld [vmem:[#allocation4 + $0x540] sm:$0xff] }
  0xa0   :  { %1078 = vmatpush.msra.mxu2 %v945_v43  ;;  %1096 = vmatpush.msra.mxu3 %v1017_v49  ;;  %v1013_v53 = vld [vmem:[#allocation4 + $0x7a0] sm:$0xff]  ;;  %v774_v43 = vld [vmem:[#allocation4 + $0x28] sm:$0xff] }
  0xa1   :  { %1039 = vmatpush.msra.mxu0 %v813_v13  ;;  %1059 = vmatpush.msra.mxu1 %v877_v4  ;;  %v933_v58 = vld [vmem:[#allocation4 + $0x520] sm:$0xff]  ;;  %v870_v4 = vld [vmem:[#allocation4 + $0x328] sm:$0xff] }
  0xa2   :  { %1079 = vmatpush.msra.mxu2 %v941_v48  ;;  %1097 = vmatpush.msra.mxu3 %v1013_v53  ;;  %v1009_v59 = vld [vmem:[#allocation4 + $0x780] sm:$0xff]  ;;  %v958_v53 = vld [vmem:[#allocation4 + $0x5e8] sm:$0xff] }
  0xa3   :  { %1040 = vmatpush.msra.mxu0 %v809_v63  ;;  %1060 = vmatpush.msra.mxu1 %v873_v18  ;;  %v929_v1 = vld [vmem:[#allocation4 + $0x500] sm:$0xff]  ;;  %v794_v63 = vld [vmem:[#allocation4 + $0xc8] sm:$0xff] }
  0xa4   :  { %1080 = vmatpush.msra.mxu2 %v937_v52  ;;  %1098 = vmatpush.msra.mxu3 %v1009_v59  ;;  %v1005_v2 = vld [vmem:[#allocation4 + $0x760] sm:$0xff]  ;;  %v846_v52 = vld [vmem:[#allocation4 + $0x268] sm:$0xff] }
  0xa5   :  { %1041 = vmatpush.msra.mxu0 %v805_v16  ;;  %1061 = vmatpush.msra.mxu1 %v869_v20  ;;  %v925_v7 = vld [vmem:[#allocation4 + $0x4e0] sm:$0xff]  ;;  %v350_v16 = vperm.slane %v1993_v55, 3  ;;  %v790_v20 = vld [vmem:[#allocation4 + $0xa8] sm:$0xff] }
  0xa6   :  { %1081 = vmatpush.msra.mxu2 %v933_v58  ;;  %1099 = vmatpush.msra.mxu3 %v1005_v2  ;;  %v1001_v8 = vld [vmem:[#allocation4 + $0x740] sm:$0xff]  ;;  %v842_v59 = vld [vmem:[#allocation4 + $0x248] sm:$0xff] }
  0xa7   :  { %1042 = vmatpush.msra.mxu0 %v801_v17  ;;  %1062 = vmatpush.msra.mxu1 %v865_v23  ;;  %v921_v13 = vld [vmem:[#allocation4 + $0x4c0] sm:$0xff] }
  0xa8   :  { %1082 = vmatpush.msra.mxu2 %v929_v1  ;;  %1100 = vmatpush.msra.mxu3 %v1001_v8  ;;  %v997_v14 = vld [vmem:[#allocation4 + $0x720] sm:$0xff]  ;;  %v838_v1 = vld [vmem:[#allocation4 + $0x228] sm:$0xff] }
  0xa9   :  { %1043 = vmatpush.msra.mxu0 %v797_v19  ;;  %1063 = vmatpush.msra.mxu1 %v861_v25  ;;  %v917_v18 = vld [vmem:[#allocation4 + $0x4a0] sm:$0xff]  ;;  %v786_v25 = vld [vmem:[#allocation4 + $0x88] sm:$0xff] }
  0xaa   :  { %1083 = vmatpush.msra.mxu2 %v925_v7  ;;  %1101 = vmatpush.msra.mxu3 %v997_v14  ;;  %v993_v19 = vld [vmem:[#allocation4 + $0x700] sm:$0xff]  ;;  %v834_v7 = vld [vmem:[#allocation4 + $0x208] sm:$0xff] }
  0xab   :  { %1044 = vmatpush.msra.mxu0 %v793_v21  ;;  %1064 = vmatpush.msra.mxu1 %v857_v27  ;;  %v866_v21 = vld [vmem:[#allocation4 + $0x308] sm:$0xff]  ;;  %v913_v23 = vld [vmem:[#allocation4 + $0x480] sm:$0xff]  ;;  %v351_v27 = vperm.slane %v1993_v55, 4 }
  0xac   :  { %1084 = vmatpush.msra.mxu2 %v921_v13  ;;  %1102 = vmatpush.msra.mxu3 %v993_v19  ;;  %v981_v37 = vld [vmem:[#allocation4 + $0x6a0] sm:$0xff]  ;;  %v946_v8 = vld [vmem:[#allocation4 + $0x588] sm:$0xff] }
  0xad   :  { %1045 = vmatpush.msra.mxu0 %v789_v22  ;;  %1065 = vmatpush.msra.mxu1 %v853_v29  ;;  %v909_v29 = vld [vmem:[#allocation4 + $0x460] sm:$0xff]  ;;  %v1018_v13 = vld [vmem:[#allocation4 + $0x7c8] sm:$0xff] }
  0xae   :  { %1085 = vmatpush.msra.mxu2 %v917_v18  ;;  %v897_v49 = vld [vmem:[#allocation4 + $0x400] sm:$0xff]  ;;  %v1010_v18 = vld [vmem:[#allocation4 + $0x788] sm:$0xff] }
  0xaf   :  { %1046 = vmatpush.msra.mxu0 %v785_v24  ;;  %1066 = vmatpush.msra.mxu1 %v849_v31  ;;  %v989_v24 = vld [vmem:[#allocation4 + $0x6e0] sm:$0xff]  ;;  %v782_v31 = vld [vmem:[#allocation4 + $0x68] sm:$0xff] }
  0xb0   :  { %1086 = vmatpush.msra.mxu2 %v913_v23  ;;  %1103 = vmatpush.msra.mxu3 %v989_v24  ;;  %v969_v58 = vld [vmem:[#allocation4 + $0x640] sm:$0xff]  ;;  %v930_v19 = vld [vmem:[#allocation4 + $0x508] sm:$0xff] }
  0xb1   :  { %1047 = vmatpush.msra.mxu0 %v781_v26  ;;  %1067 = vmatpush.msra.mxu1 %v845_v33  ;;  %v858_v33 = vld [vmem:[#allocation4 + $0x2c8] sm:$0xff] }
  0xb2   :  { %1087 = vmatpush.msra.mxu2 %v909_v29  ;;  %v926_v23 = vld [vmem:[#allocation4 + $0x4e8] sm:$0xff] }
  0xb3   :  { %1048 = vmatpush.msra.mxu0 %v777_v28  ;;  %1068 = vmatpush.msra.mxu1 %v841_v36  ;;  %v862_v28 = vld [vmem:[#allocation4 + $0x2e8] sm:$0xff]  ;;  %v905_v36 = vld [vmem:[#allocation4 + $0x440] sm:$0xff] }
  0xb4   :  { %1088 = vmatpush.msra.mxu2 %v905_v36  ;;  %v1002_v24 = vld [vmem:[#allocation4 + $0x748] sm:$0xff] }
  0xb5   :  { %1049 = vmatpush.msra.mxu0 %v773_v30  ;;  %1069 = vmatpush.msra.mxu1 %v837_v39  ;;  %v985_v30 = vld [vmem:[#allocation4 + $0x6c0] sm:$0xff] }
  0xb6   :  { %1104 = vmatpush.msra.mxu3 %v985_v30 }
  0xb7   :  { %1050 = vmatpush.msra.mxu0 %v769_v32  ;;  %1070 = vmatpush.msra.mxu1 %v833_v42  ;;  %v977_v42 = vld [vmem:[#allocation4 + $0x680] sm:$0xff] }
  0xb8   :  { %1105 = vmatpush.msra.mxu3 %v981_v37  ;;  %v914_v37 = vld [vmem:[#allocation4 + $0x488] sm:$0xff] }
  0xb9   :  { %1115 = vmatpush.msrb.mxu0 %v830_v35  ;;  %1135 = vmatpush.msrb.mxu1 %v894_v46  ;;  %v850_v46 = vld [vmem:[#allocation4 + $0x288] sm:$0xff] }
  0xba   :  { %1106 = vmatpush.msra.mxu3 %v977_v42 }
  0xbb   :  { %1116 = vmatpush.msrb.mxu0 %v826_v38  ;;  %1136 = vmatpush.msrb.mxu1 %v890_v51  ;;  %v778_v38 = vld [vmem:[#allocation4 + $0x48] sm:$0xff] }
  0xbc   :  { %v770_v51 = vld [vmem:[#allocation4 + $0x8] sm:$0xff] }
  0xbd   :  { %1117 = vmatpush.msrb.mxu0 %v822_v41  ;;  %1137 = vmatpush.msrb.mxu1 %v886_v57  ;;  %v901_v41 = vld [vmem:[#allocation4 + $0x420] sm:$0xff] }
  0xbe   :  { %1089 = vmatpush.msra.mxu2 %v901_v41  ;;  %v871_v41 = vld [vmem:[#allocation4 + $0x330] sm:$0xff] }
  0xbf   :  { %1118 = vmatpush.msrb.mxu0 %v818_v45  ;;  %1138 = vmatpush.msrb.mxu1 %v882_v62  ;;  %v352_v45 = vperm.slane %v1993_v55, 5  ;;  %v965_v62 = vld [vmem:[#allocation4 + $0x620] sm:$0xff] }
  0xc0   :  { %1090 = vmatpush.msra.mxu2 %v897_v49  ;;  %v353_v49 = vperm.slane %v1993_v55, 6 }
  0xc1   :  { %1119 = vmatpush.msrb.mxu0 %v814_v50  ;;  %1139 = vmatpush.msrb.mxu1 %v878_v5  ;;  %v973_v50 = vld [vmem:[#allocation4 + $0x660] sm:$0xff] }
  0xc2   :  { %1107 = vmatpush.msra.mxu3 %v973_v50  ;;  %1155 = vmatpush.msrb.mxu2 %v958_v53 }
  0xc3   :  { %1120 = vmatpush.msrb.mxu0 %v810_v54  ;;  %1140 = vmatpush.msrb.mxu1 %v874_v12  ;;  %v942_v12 = vld [vmem:[#allocation4 + $0x568] sm:$0xff] }
  0xc4   :  { %1108 = vmatpush.msra.mxu3 %v969_v58 }
  0xc5   :  { %1121 = vmatpush.msrb.mxu0 %v806_v60  ;;  %1141 = vmatpush.msrb.mxu1 %v870_v4  ;;  %v934_v4 = vld [vmem:[#allocation4 + $0x528] sm:$0xff] }
  0xc6   :  { %1109 = vmatpush.msra.mxu3 %v965_v62 }
  0xc7   :  { %1122 = vmatpush.msrb.mxu0 %v802_v3  ;;  %1142 = vmatpush.msrb.mxu1 %v866_v21  ;;  %v950_v3 = vld [vmem:[#allocation4 + $0x5a8] sm:$0xff] }
  0xc9   :  { %1123 = vmatpush.msrb.mxu0 %v798_v9  ;;  %1143 = vmatpush.msrb.mxu1 %v862_v28  ;;  %v1022_v9 = vld [vmem:[#allocation4 + $0x7e8] sm:$0xff] }
  0xca   :  { %v998_v28 = vld [vmem:[#allocation4 + $0x728] sm:$0xff] }
  0xcb   :  { %1124 = vmatpush.msrb.mxu0 %v794_v63  ;;  %1144 = vmatpush.msrb.mxu1 %v858_v33 }
  0xcd   :  { %v1988_v47 = vpop.f32.mrf.mxu0  ;;  %1125 = vmatpush.msrb.mxu0 %v790_v20  ;;  %1145 = vmatpush.msrb.mxu1 %v854_v40  ;;  %v1006_v20 = vld [vmem:[#allocation4 + $0x768] sm:$0xff] }
  0xcf   :  { %1126 = vmatpush.msrb.mxu0 %v786_v25  ;;  %1146 = vmatpush.msrb.mxu1 %v850_v46 }
  0xd0   :  { %v1995_v56 = vpop.f32.mrf.mxu1 }
  0xd1   :  { %1127 = vmatpush.msrb.mxu0 %v782_v31  ;;  %1147 = vmatpush.msrb.mxu1 %v846_v52  ;;  %v918_v31 = vld [vmem:[#allocation4 + $0x4a8] sm:$0xff] }
  0xd2   :  { %v982_v52 = vld [vmem:[#allocation4 + $0x6a8] sm:$0xff] }
  0xd3   :  { %v1998_v0 = vpop.f32.mrf.mxu2  ;;  %1128 = vmatpush.msrb.mxu0 %v778_v38  ;;  %1148 = vmatpush.msrb.mxu1 %v842_v59  ;;  %v990_v38 = vld [vmem:[#allocation4 + $0x6e8] sm:$0xff] }
  0xd4   :  { %v978_v59 = vld [vmem:[#allocation4 + $0x688] sm:$0xff] }
  0xd5   :  { %1129 = vmatpush.msrb.mxu0 %v774_v43  ;;  %1149 = vmatpush.msrb.mxu1 %v838_v1  ;;  %v910_v43 = vld [vmem:[#allocation4 + $0x468] sm:$0xff]  ;;  %v831_v1 = vld [vmem:[#allocation4 + $0x1f0] sm:$0xff] }
  0xd6   :  { %v2000_v10 = vpop.f32.mrf.mxu3 }
  0xd7   :  { %1130 = vmatpush.msrb.mxu0 %v770_v51  ;;  %1150 = vmatpush.msrb.mxu1 %v834_v7  ;;  %v906_v51 = vld [vmem:[#allocation4 + $0x448] sm:$0xff] }
  0xe7   :  { %v466_v6 = vpop.f32.mrf.mxu0 }
  0xe8   :  { %v467_v11 = vadd.f32 %v466_v6, %v349_v61  ;;  %v954_v61 = vld [vmem:[#allocation4 + $0x5c8] sm:$0xff]  ;;  %v961_v6 = vld [vmem:[#allocation4 + $0x600] sm:$0xff] }
  0xe9   :  { %1156 = vmatpush.msrb.mxu2 %v954_v61  ;;  %1110 = vmatpush.msra.mxu3 %v961_v6 }
  0xea   :  { %v486_v15 = vpop.f32.mrf.mxu1 }
  0xeb   :  { %v2003_v17 = vadd.f32 %v486_v15, %v467_v11  ;;  %1157 = vmatpush.msrb.mxu2 %v950_v3  ;;  %1175 = vmatpush.msrb.mxu3 %v1022_v9  ;;  %v938_v15 = vld [vmem:[#allocation4 + $0x548] sm:$0xff] }
  0xec   :  { %v898_v3 = vld [vmem:[#allocation4 + $0x408] sm:$0xff] }
  0xed   :  { %v506_v22 = vpop.f32.mrf.mxu2  ;;  %1158 = vmatpush.msrb.mxu2 %v946_v8  ;;  %1176 = vmatpush.msrb.mxu3 %v1018_v13  ;;  %v354_v13 = vperm.slane %v1993_v55, 7 }
  0xee   :  { %v507_v26 = vadd.f32 %v506_v22, %v350_v16  ;;  %v1014_v16 = vld [vmem:[#allocation4 + $0x7a8] sm:$0xff] }
  0xef   :  { %1159 = vmatpush.msrb.mxu2 %v942_v12  ;;  %1177 = vmatpush.msrb.mxu3 %v1014_v16  ;;  %v970_v16 = vld [vmem:[#allocation4 + $0x648] sm:$0xff] }
  0xf0   :  { %v526_v32 = vpop.f32.mrf.mxu3 }
  0xf1   :  { %v2006_v34 = vadd.f32 %v526_v32, %v507_v26  ;;  %v546_v35 = vpop.f32.mrf.mxu0  ;;  %1160 = vmatpush.msrb.mxu2 %v938_v15  ;;  %1178 = vmatpush.msrb.mxu3 %v1010_v18  ;;  %v347_v26 = vperm.slane %v1993_v55, 0  ;;  %v994_v32 = vld [vmem:[#allocation4 + $0x708] sm:$0xff] }
  0xf2   :  { %v547_v39 = vadd.f32 %v546_v35, %v351_v27  ;;  %v922_v27 = vld [vmem:[#allocation4 + $0x4c8] sm:$0xff] }
  0xf3   :  { %1161 = vmatpush.msrb.mxu2 %v934_v4  ;;  %1179 = vmatpush.msrb.mxu3 %v1006_v20  ;;  %v387_v36 = vadd.f32 %v1988_v47, %v347_v26  ;;  %v962_v26 = vld [vmem:[#allocation4 + $0x608] sm:$0xff] }
  0xf4   :  { %v566_v44 = vpop.f32.mrf.mxu1 }
  0xf5   :  { %v567_v48 = vadd.f32 %v566_v44, %v547_v39  ;;  %1162 = vmatpush.msrb.mxu2 %v930_v19  ;;  %1180 = vmatpush.msrb.mxu3 %v1002_v24  ;;  %v986_v44 = vld [vmem:[#allocation4 + $0x6c8] sm:$0xff]  ;;  %v407_v47 = vadd.f32 %v1995_v56, %v387_v36  ;;  %v815_v24 = vld [vmem:[#allocation4 + $0x170] sm:$0xff] }
  0xf6   :  { %v902_v56 = vld [vmem:[#allocation4 + $0x428] sm:$0xff]  ;;  %v803_v36 = vld [vmem:[#allocation4 + $0x110] sm:$0xff] }
  0xf7   :  { %v1739_v54 = vmul.f32 -1.442695, %v567_v48  ;;  %v586_v57 = vpop.f32.mrf.mxu2  ;;  %1163 = vmatpush.msrb.mxu2 %v926_v23  ;;  %1181 = vmatpush.msrb.mxu3 %v998_v28  ;;  %v966_v23 = vld [vmem:[#allocation4 + $0x628] sm:$0xff]  ;;  %v811_v28 = vld [vmem:[#allocation4 + $0x150] sm:$0xff] }
  0xf8   :  { %v587_v60 = vadd.f32 %v586_v57, %v352_v45  ;;  %v348_v45 = vperm.slane %v1993_v55, 1 }
  0xf9   :  { %1766 = vpow2.f32 %v1739_v54  ;;  %1164 = vmatpush.msrb.mxu2 %v922_v27  ;;  %1182 = vmatpush.msrb.mxu3 %v994_v32  ;;  %v883_v32 = vld [vmem:[#allocation4 + $0x390] sm:$0xff] }
  0xfa   :  { %v606_v2 = vpop.f32.mrf.mxu3 }
  0xfb   :  { %v607_v5 = vadd.f32 %v606_v2, %v587_v60  ;;  %1165 = vmatpush.msrb.mxu2 %v918_v31  ;;  %1183 = vmatpush.msrb.mxu3 %v990_v38  ;;  %v427_v60 = vadd.f32 %v1998_v0, %v348_v45  ;;  %v827_v0 = vld [vmem:[#allocation4 + $0x1d0] sm:$0xff] }
  0xfc   :  { %v807_v31 = vld [vmem:[#allocation4 + $0x130] sm:$0xff] }
  0xfd   :  { %v1740_v11 = vmul.f32 -1.442695, %v607_v5  ;;  %1166 = vmatpush.msrb.mxu2 %v914_v37  ;;  %1184 = vmatpush.msrb.mxu3 %v986_v44  ;;  %v974_v5 = vld [vmem:[#allocation4 + $0x668] sm:$0xff]  ;;  %v879_v37 = vld [vmem:[#allocation4 + $0x370] sm:$0xff] }
  0xfe   :  { %v799_v38 = vld [vmem:[#allocation4 + $0xf0] sm:$0xff] }
  0xff   :  { %v1767_v14 = vpop.eup %1766  ;;  %1768 = vpow2.f32 %v1740_v11  ;;  %1167 = vmatpush.msrb.mxu2 %v910_v43  ;;  %1185 = vmatpush.msrb.mxu3 %v982_v52  ;;  %v791_v44 = vld [vmem:[#allocation4 + $0xb0] sm:$0xff] }
 0x100   :  { %v701_v63 = vadd.f32 1.0, %v1767_v14  ;;  %v447_v14 = vadd.f32 %v2000_v10, %v427_v60  ;;  %v867_v45 = vld [vmem:[#allocation4 + $0x310] sm:$0xff] }
 0x101   :  { %1168 = vmatpush.msrb.mxu2 %v906_v51  ;;  %1186 = vmatpush.msrb.mxu3 %v978_v59  ;;  %v859_v51 = vld [vmem:[#allocation4 + $0x2d0] sm:$0xff] }
 0x102   :  { %1770 = vrcp.f32 %v701_v63  ;;  %v716_v30 = vand.u32 2147483648, %v701_v63  ;;  %vm710_vm0 = vweird.f32 %v701_v63  ;;  %v714_v35 = vand.u32 2147483647, %v701_v63  ;;  %v775_v60 = vld [vmem:[#allocation4 + $0x30] sm:$0xff] }
 0x103   :  { %1169 = vmatpush.msrb.mxu2 %v902_v56  ;;  %1187 = vmatpush.msrb.mxu3 %v974_v5  ;;  %v847_v5 = vld [vmem:[#allocation4 + $0x270] sm:$0xff] }
 0x104   :  { %v717_v42 = vor.u32 1.1754944e-38, %v716_v30  ;;  %vm715_vm3 = vcmp.eq.f32.partialorder %v714_v35, 8.507059e+37 }
 0x105   :  { %v1769_v21 = vpop.eup %1768  ;;  %1170 = vmatpush.msrb.mxu2 %v898_v3  ;;  %1188 = vmatpush.msrb.mxu3 %v970_v16  ;;  %v771_v3 = vld [vmem:[#allocation4 + $0x10] sm:$0xff]  ;;  %v828_v16 = vld [vmem:[#allocation4 + $0x1d8] sm:$0xff] }
 0x106   :  { %v2009_v22 = vadd.f32 1.0, %v1769_v21  ;;  %v819_v21 = vld [vmem:[#allocation4 + $0x190] sm:$0xff] }
 0x107   :  { %1189 = vmatpush.msrb.mxu3 %v966_v23  ;;  %v835_v23 = vld [vmem:[#allocation4 + $0x210] sm:$0xff] }
 0x108   :  { %v1771_v25 = vpop.eup %1770  ;;  %1772 = vrcp.f32 %v2009_v22  ;;  %vm725_vm4 = vweird.f32 %v2009_v22  ;;  %v731_v50 = vand.u32 2147483648, %v2009_v22  ;;  %v729_v57 = vand.u32 2147483647, %v2009_v22 }
 0x109   :  { %v706_v29 = vmul.f32 %v1771_v25, %v701_v63  ;;  %vm711_vm1 = vweird.f32 %v1771_v25  ;;  %v823_v63 = vld [vmem:[#allocation4 + $0x1b0] sm:$0xff]  ;;  %1190 = vmatpush.msrb.mxu3 %v962_v26 }
 0x10a   :  { %vm2014_vm2 = vmor %vm710_vm0, %vm711_vm1  ;;  %v732_v8 = vor.u32 1.1754944e-38, %v731_v50  ;;  %vm730_vm7 = vcmp.eq.f32.partialorder %v729_v57, 8.507059e+37  ;;  %v783_v50 = vld [vmem:[#allocation4 + $0x70] sm:$0xff] }
 0x10b   :  { %v707_v33 = vsub.f32 1.0, %v706_v29  ;;  %v887_v29 = vld [vmem:[#allocation4 + $0x3b0] sm:$0xff] }
 0x10c   :  { %v1023_v26 = vld [vmem:[#allocation4 + $0x7f0] sm:$0xff] }
 0x10d   :  { %v708_v39 = vmul.f32 %v1771_v25, %v707_v33 }
 0x10e   :  { %v1773_v40 = vpop.eup %1772 }
 0x10f   :  { %v721_v46 = vmul.f32 %v1773_v40, %v2009_v22  ;;  %v709_v48 = vadd.f32 %v1771_v25, %v708_v39  ;;  %vm726_vm5 = vweird.f32 %v1773_v40  ;;  %v895_v22 = vld [vmem:[#allocation4 + $0x3f0] sm:$0xff] }
 0x110   :  { %vm2033_vm6 = vmor %vm725_vm4, %vm726_vm5  ;;  %v875_v39 = vld [vmem:[#allocation4 + $0x350] sm:$0xff] }
 0x111   :  { %v722_v53 = vsub.f32 1.0, %v721_v46  ;;  %v713_v54 = vsel %vm2014_vm2, %v1771_v25, %v709_v48  ;;  %v891_v25 = vld [vmem:[#allocation4 + $0x3d0] sm:$0xff] }
 0x112   :  { %v718_v58 = vsel %vm715_vm3, %v717_v42, %v713_v54  ;;  %v787_v48 = vld [vmem:[#allocation4 + $0x90] sm:$0xff] }
 0x113   :  { %v626_v61 = vpop.f32.mrf.mxu0  ;;  %v2028_v62 = vmul.f32 %v718_v58, %v407_v47  ;;  %v723_v2 = vmul.f32 %v1773_v40, %v722_v53  ;;  %v863_v47 = vld [vmem:[#allocation4 + $0x2f0] sm:$0xff] }
 0x114   :  { %v627_v6 = vadd.f32 %v626_v61, %v353_v49  ;;  %v779_v53 = vld [vmem:[#allocation4 + $0x50] sm:$0xff] }
 0x115   :  { %v646_v9 = vpop.f32.mrf.mxu1  ;;  %1051 = vmatmul.f32.vlgmr.msra.gmra.mxu0 %v2028_v62  ;;  %v724_v11 = vadd.f32 %v1773_v40, %v723_v2  ;;  %v855_v54 = vld [vmem:[#allocation4 + $0x2b0] sm:$0xff] }
 0x116   :  { %v647_v12 = vadd.f32 %v646_v9, %v627_v6  ;;  %1195 = vmatpush.msra.mxu0 %v831_v1  ;;  %v851_v61 = vld [vmem:[#allocation4 + $0x290] sm:$0xff] }
 0x117   :  { %v728_v15 = vsel %vm2033_vm6, %v1773_v40, %v724_v11  ;;  %v795_v40 = vld [vmem:[#allocation4 + $0xd0] sm:$0xff] }
 0x118   :  { %v1741_v4 = vmul.f32 -1.442695, %v647_v12  ;;  %1196 = vmatpush.msra.mxu0 %v827_v0  ;;  %v733_v18 = vsel %vm730_vm7, %v732_v8, %v728_v15  ;;  %v832_v0 = vld [vmem:[#allocation4 + $0x1f8] sm:$0xff] }
 0x119   :  { %v666_v19 = vpop.f32.mrf.mxu2  ;;  %v2042_v20 = vmul.f32 %v733_v18, %v447_v14  ;;  %v843_v14 = vld [vmem:[#allocation4 + $0x250] sm:$0xff] }
 0x11a   :  { %1774 = vpow2.f32 %v1741_v4  ;;  %v667_v55 = vadd.f32 %v666_v19, %v354_v13  ;;  %1197 = vmatpush.msra.mxu0 %v823_v63  ;;  %v959_v13 = vld [vmem:[#allocation4 + $0x5f0] sm:$0xff] }
 0x11b   :  { %v686_v10 = vpop.f32.mrf.mxu3  ;;  %1071 = vmatmul.f32.vlgmr.msra.gmra.mxu1 %v2042_v20  ;;  %v955_v4 = vld [vmem:[#allocation4 + $0x5d0] sm:$0xff] }
 0x11c   :  { %v687_v27 = vadd.f32 %v686_v10, %v667_v55  ;;  %1198 = vmatpush.msra.mxu0 %v819_v21  ;;  %1215 = vmatpush.msra.mxu1 %v895_v22  ;;  %v839_v18 = vld [vmem:[#allocation4 + $0x230] sm:$0xff] }
 0x11d   :  { %1131 = vmatmul.f32.vlgmr.msrb.gmra.mxu0 %v2028_v62  ;;  %v951_v22 = vld [vmem:[#allocation4 + $0x5b0] sm:$0xff] }
 0x11e   :  { %v1742_v30 = vmul.f32 -1.442695, %v687_v27  ;;  %1199 = vmatpush.msra.mxu0 %v815_v24  ;;  %1216 = vmatpush.msra.mxu1 %v891_v25  ;;  %v947_v25 = vld [vmem:[#allocation4 + $0x590] sm:$0xff]  ;;  %v820_v27 = vld [vmem:[#allocation4 + $0x198] sm:$0xff] }
 0x120   :  { %v1775_v33 = vpop.eup %1774  ;;  %1776 = vpow2.f32 %v1742_v30  ;;  %1200 = vmatpush.msra.mxu0 %v811_v28  ;;  %1217 = vmatpush.msra.mxu1 %v887_v29  ;;  %v896_v28 = vld [vmem:[#allocation4 + $0x3f8] sm:$0xff]  ;;  %v1019_v29 = vld [vmem:[#allocation4 + $0x7d0] sm:$0xff] }
 0x121   :  { %v703_v35 = vadd.f32 1.0, %v1775_v33  ;;  %v943_v30 = vld [vmem:[#allocation4 + $0x570] sm:$0xff] }
 0x122   :  { %1201 = vmatpush.msra.mxu0 %v807_v31  ;;  %1218 = vmatpush.msra.mxu1 %v883_v32  ;;  %v816_v31 = vld [vmem:[#allocation4 + $0x178] sm:$0xff]  ;;  %v939_v33 = vld [vmem:[#allocation4 + $0x550] sm:$0xff] }
 0x123   :  { %1778 = vrcp.f32 %v703_v35  ;;  %1151 = vmatmul.f32.vlgmr.msrb.gmra.mxu1 %v2042_v20  ;;  %v746_v57 = vand.u32 2147483648, %v703_v35  ;;  %v744_v56 = vand.u32 2147483647, %v703_v35  ;;  %vm740_vm9 = vweird.f32 %v703_v35  ;;  %v892_v32 = vld [vmem:[#allocation4 + $0x3d8] sm:$0xff] }
 0x124   :  { %1202 = vmatpush.msra.mxu0 %v803_v36  ;;  %1219 = vmatpush.msra.mxu1 %v879_v37  ;;  %v888_v36 = vld [vmem:[#allocation4 + $0x3b8] sm:$0xff]  ;;  %v1011_v37 = vld [vmem:[#allocation4 + $0x790] sm:$0xff] }
 0x125   :  { %v747_v6 = vor.u32 1.1754944e-38, %v746_v57  ;;  %vm745_vm11 = vcmp.eq.f32.partialorder %v744_v56, 8.507059e+37  ;;  %v792_v57 = vld [vmem:[#allocation4 + $0xb8] sm:$0xff]  ;;  %v915_v56 = vld [vmem:[#allocation4 + $0x490] sm:$0xff] }
 0x126   :  { %v1777_v42 = vpop.eup %1776  ;;  %1203 = vmatpush.msra.mxu0 %v799_v38  ;;  %1220 = vmatpush.msra.mxu1 %v875_v39  ;;  %v935_v38 = vld [vmem:[#allocation4 + $0x530] sm:$0xff]  ;;  %v808_v39 = vld [vmem:[#allocation4 + $0x138] sm:$0xff] }
 0x127   :  { %v2047_v43 = vadd.f32 1.0, %v1777_v42  ;;  %v1007_v42 = vld [vmem:[#allocation4 + $0x770] sm:$0xff] }
 0x128   :  { %1204 = vmatpush.msra.mxu0 %v795_v40  ;;  %1221 = vmatpush.msra.mxu1 %v871_v41  ;;  %v884_v40 = vld [vmem:[#allocation4 + $0x398] sm:$0xff]  ;;  %v931_v41 = vld [vmem:[#allocation4 + $0x510] sm:$0xff] }
 0x129   :  { %v1779_v46 = vpop.eup %1778  ;;  %1780 = vrcp.f32 %v2047_v43  ;;  %v761_v11 = vand.u32 2147483648, %v2047_v43  ;;  %v759_v15 = vand.u32 2147483647, %v2047_v43  ;;  %vm755_vm13 = vweird.f32 %v2047_v43 }
 0x12a   :  { %v736_v49 = vmul.f32 %v1779_v46, %v703_v35  ;;  %1205 = vmatpush.msra.mxu0 %v791_v44  ;;  %1222 = vmatpush.msra.mxu1 %v867_v45  ;;  %vm741_vm8 = vweird.f32 %v1779_v46  ;;  %v812_v35 = vld [vmem:[#allocation4 + $0x158] sm:$0xff]  ;;  %v927_v45 = vld [vmem:[#allocation4 + $0x4f0] sm:$0xff] }
 0x12b   :  { %vm742_vm10 = vmor %vm740_vm9, %vm741_vm8  ;;  %v762_v21 = vor.u32 1.1754944e-38, %v761_v11  ;;  %vm760_vm15 = vcmp.eq.f32.partialorder %v759_v15, 8.507059e+37  ;;  %v880_v44 = vld [vmem:[#allocation4 + $0x378] sm:$0xff]  ;;  %v979_v11 = vld [vmem:[#allocation4 + $0x690] sm:$0xff] }
 0x12c   :  { %v737_v52 = vsub.f32 1.0, %v736_v49  ;;  %1206 = vmatpush.msra.mxu0 %v787_v48  ;;  %1223 = vmatpush.msra.mxu1 %v863_v47  ;;  %v800_v48 = vld [vmem:[#allocation4 + $0xf8] sm:$0xff]  ;;  %v923_v49 = vld [vmem:[#allocation4 + $0x4d0] sm:$0xff] }
 0x12d   :  { %v876_v47 = vld [vmem:[#allocation4 + $0x358] sm:$0xff]  ;;  %v975_v15 = vld [vmem:[#allocation4 + $0x670] sm:$0xff] }
 0x12e   :  { %1207 = vmatpush.msra.mxu0 %v783_v50  ;;  %1224 = vmatpush.msra.mxu1 %v859_v51  ;;  %v738_v58 = vmul.f32 %v1779_v46, %v737_v52  ;;  %v999_v50 = vld [vmem:[#allocation4 + $0x730] sm:$0xff]  ;;  %v796_v51 = vld [vmem:[#allocation4 + $0xd8] sm:$0xff] }
 0x12f   :  { %v1781_v59 = vpop.eup %1780  ;;  %v872_v52 = vld [vmem:[#allocation4 + $0x338] sm:$0xff] }
 0x130   :  { %v751_v1 = vmul.f32 %v1781_v59, %v2047_v43  ;;  %1208 = vmatpush.msra.mxu0 %v779_v53  ;;  %1225 = vmatpush.msra.mxu1 %v855_v54  ;;  %v739_v2 = vadd.f32 %v1779_v46, %v738_v58  ;;  %vm756_vm12 = vweird.f32 %v1781_v59  ;;  %v804_v43 = vld [vmem:[#allocation4 + $0x118] sm:$0xff]  ;;  %v919_v53 = vld [vmem:[#allocation4 + $0x4b0] sm:$0xff] }
 0x131   :  { %vm757_vm14 = vmor %vm755_vm13, %vm756_vm12  ;;  %v995_v54 = vld [vmem:[#allocation4 + $0x710] sm:$0xff]  ;;  %v868_v58 = vld [vmem:[#allocation4 + $0x318] sm:$0xff] }
 0x132   :  { %v752_v7 = vsub.f32 1.0, %v751_v1  ;;  %1209 = vmatpush.msra.mxu0 %v775_v60  ;;  %1226 = vmatpush.msra.mxu1 %v851_v61  ;;  %v743_v8 = vsel %vm742_vm10, %v1779_v46, %v739_v2  ;;  %v1003_v46 = vld [vmem:[#allocation4 + $0x750] sm:$0xff]  ;;  %v788_v60 = vld [vmem:[#allocation4 + $0x98] sm:$0xff] }
 0x133   :  { %v748_v9 = vsel %vm745_vm11, %v747_v6, %v743_v8  ;;  %v864_v61 = vld [vmem:[#allocation4 + $0x2f8] sm:$0xff]  ;;  %v911_v1 = vld [vmem:[#allocation4 + $0x470] sm:$0xff] }
 0x134   :  { %1210 = vmatpush.msra.mxu0 %v771_v3  ;;  %1227 = vmatpush.msra.mxu1 %v847_v5  ;;  %v2053_v12 = vmul.f32 %v748_v9, %v2003_v17  ;;  %v753_v63 = vmul.f32 %v1781_v59, %v752_v7  ;;  %v824_v17 = vld [vmem:[#allocation4 + $0x1b8] sm:$0xff]  ;;  %v987_v2 = vld [vmem:[#allocation4 + $0x6d0] sm:$0xff] }
 0x135   :  { %1211 = vmatmul.f32.vlgmr.msra.gmra.mxu0 %v2028_v62  ;;  %v784_v3 = vld [vmem:[#allocation4 + $0x78] sm:$0xff]  ;;  %v907_v6 = vld [vmem:[#allocation4 + $0x450] sm:$0xff] }
 0x136   :  { %1091 = vmatmul.f32.vlgmr.msra.gmra.mxu2 %v2053_v12  ;;  %1275 = vmatpush.msrb.mxu0 %v832_v0  ;;  %v754_v19 = vadd.f32 %v1781_v59, %v753_v63  ;;  %v860_v5 = vld [vmem:[#allocation4 + $0x2d8] sm:$0xff]  ;;  %v983_v7 = vld [vmem:[#allocation4 + $0x6b0] sm:$0xff] }
 0x137   :  { %1235 = vmatpush.msra.mxu2 %v959_v13  ;;  %1228 = vmatpush.msra.mxu1 %v843_v14  ;;  %v780_v8 = vld [vmem:[#allocation4 + $0x58] sm:$0xff]  ;;  %v903_v0 = vld [vmem:[#allocation4 + $0x430] sm:$0xff] }
 0x138   :  { %1276 = vmatpush.msrb.mxu0 %v828_v16  ;;  %v758_v55 = vsel %vm757_vm14, %v1781_v59, %v754_v19  ;;  %v991_v59 = vld [vmem:[#allocation4 + $0x6f0] sm:$0xff]  ;;  %v856_v9 = vld [vmem:[#allocation4 + $0x2b8] sm:$0xff] }
 0x139   :  { %1236 = vmatpush.msra.mxu2 %v955_v4  ;;  %1229 = vmatpush.msra.mxu1 %v839_v18  ;;  %v763_v10 = vsel %vm760_vm15, %v762_v21, %v758_v55  ;;  %v776_v13 = vld [vmem:[#allocation4 + $0x38] sm:$0xff]  ;;  %v899_v63 = vld [vmem:[#allocation4 + $0x410] sm:$0xff] }
 0x13a   :  { %1277 = vmatpush.msrb.mxu0 %v824_v17  ;;  %v2060_v24 = vmul.f32 %v763_v10, %v2006_v34  ;;  %v1015_v34 = vld [vmem:[#allocation4 + $0x7b0] sm:$0xff]  ;;  %v852_v14 = vld [vmem:[#allocation4 + $0x298] sm:$0xff] }
 0x13b   :  { %1237 = vmatpush.msra.mxu2 %v951_v22  ;;  %1230 = vmatpush.msra.mxu1 %v835_v23  ;;  %v772_v16 = vld [vmem:[#allocation4 + $0x18] sm:$0xff]  ;;  %v971_v19 = vld [vmem:[#allocation4 + $0x650] sm:$0xff] }
 0x13c   :  { %1111 = vmatmul.f32.vlgmr.msra.gmra.mxu3 %v2060_v24  ;;  %1231 = vmatmul.f32.vlgmr.msra.gmra.mxu1 %v2042_v20  ;;  %v848_v4 = vld [vmem:[#allocation4 + $0x278] sm:$0xff]  ;;  %v967_v22 = vld [vmem:[#allocation4 + $0x630] sm:$0xff] }
 0x13d   :  { %1238 = vmatpush.msra.mxu2 %v947_v25  ;;  %1255 = vmatpush.msra.mxu3 %v1023_v26  ;;  %v960_v18 = vld [vmem:[#allocation4 + $0x5f8] sm:$0xff]  ;;  %v963_v10 = vld [vmem:[#allocation4 + $0x610] sm:$0xff] }
 0x13e   :  { %1278 = vmatpush.msrb.mxu0 %v820_v27  ;;  %1295 = vmatpush.msrb.mxu1 %v896_v28  ;;  %v844_v17 = vld [vmem:[#allocation4 + $0x258] sm:$0xff] }
 0x13f   :  { %1171 = vmatmul.f32.vlgmr.msrb.gmra.mxu2 %v2053_v12  ;;  %1256 = vmatpush.msra.mxu3 %v1019_v29  ;;  %v956_v21 = vld [vmem:[#allocation4 + $0x5d8] sm:$0xff] }
 0x140   :  { %1239 = vmatpush.msra.mxu2 %v943_v30  ;;  %1279 = vmatpush.msrb.mxu0 %v816_v31  ;;  %v840_v23 = vld [vmem:[#allocation4 + $0x238] sm:$0xff] }
 0x141   :  { %1296 = vmatpush.msrb.mxu1 %v892_v32  ;;  %1257 = vmatpush.msra.mxu3 %v1015_v34  ;;  %v952_v55 = vld [vmem:[#allocation4 + $0x5b8] sm:$0xff] }
 0x142   :  { %1240 = vmatpush.msra.mxu2 %v939_v33  ;;  %1280 = vmatpush.msrb.mxu0 %v812_v35  ;;  %v836_v25 = vld [vmem:[#allocation4 + $0x218] sm:$0xff] }
 0x143   :  { %1297 = vmatpush.msrb.mxu1 %v888_v36  ;;  %1258 = vmatpush.msra.mxu3 %v1011_v37  ;;  %v948_v26 = vld [vmem:[#allocation4 + $0x598] sm:$0xff] }
 0x144   :  { %1241 = vmatpush.msra.mxu2 %v935_v38  ;;  %1281 = vmatpush.msrb.mxu0 %v808_v39  ;;  %v1024_v27 = vld [vmem:[#allocation4 + $0x7f8] sm:$0xff] }
 0x145   :  { %1298 = vmatpush.msrb.mxu1 %v884_v40  ;;  %1191 = vmatmul.f32.vlgmr.msrb.gmra.mxu3 %v2060_v24  ;;  %v1020_v28 = vld [vmem:[#allocation4 + $0x7d8] sm:$0xff] }
 0x146   :  { %1242 = vmatpush.msra.mxu2 %v931_v41  ;;  %1259 = vmatpush.msra.mxu3 %v1007_v42  ;;  %v940_v29 = vld [vmem:[#allocation4 + $0x558] sm:$0xff] }
 0x147   :  { %1282 = vmatpush.msrb.mxu0 %v804_v43  ;;  %1299 = vmatpush.msrb.mxu1 %v880_v44  ;;  %v1016_v30 = vld [vmem:[#allocation4 + $0x7b8] sm:$0xff] }
 0x148   :  { %1243 = vmatpush.msra.mxu2 %v927_v45  ;;  %1260 = vmatpush.msra.mxu3 %v1003_v46  ;;  %v936_v31 = vld [vmem:[#allocation4 + $0x538] sm:$0xff] }
 0x149   :  { %1283 = vmatpush.msrb.mxu0 %v800_v48  ;;  %1300 = vmatpush.msrb.mxu1 %v876_v47  ;;  %v1012_v32 = vld [vmem:[#allocation4 + $0x798] sm:$0xff] }
 0x14a   :  { %1244 = vmatpush.msra.mxu2 %v923_v49  ;;  %1261 = vmatpush.msra.mxu3 %v999_v50  ;;  %v932_v34 = vld [vmem:[#allocation4 + $0x518] sm:$0xff] }
 0x14b   :  { %1284 = vmatpush.msrb.mxu0 %v796_v51  ;;  %1301 = vmatpush.msrb.mxu1 %v872_v52  ;;  %v1008_v33 = vld [vmem:[#allocation4 + $0x778] sm:$0xff] }
 0x14c   :  { %1245 = vmatpush.msra.mxu2 %v919_v53  ;;  %1262 = vmatpush.msra.mxu3 %v995_v54  ;;  %v928_v35 = vld [vmem:[#allocation4 + $0x4f8] sm:$0xff] }
 0x14d   :  { %1285 = vmatpush.msrb.mxu0 %v792_v57  ;;  %1302 = vmatpush.msrb.mxu1 %v868_v58  ;;  %v1004_v36 = vld [vmem:[#allocation4 + $0x758] sm:$0xff] }
 0x14e   :  { %1246 = vmatpush.msra.mxu2 %v915_v56  ;;  %1263 = vmatpush.msra.mxu3 %v991_v59  ;;  %v1000_v37 = vld [vmem:[#allocation4 + $0x738] sm:$0xff] }
 0x14f   :  { %1286 = vmatpush.msrb.mxu0 %v788_v60  ;;  %1303 = vmatpush.msrb.mxu1 %v864_v61  ;;  %v920_v38 = vld [vmem:[#allocation4 + $0x4b8] sm:$0xff] }
 0x150   :  { %1247 = vmatpush.msra.mxu2 %v911_v1  ;;  %1264 = vmatpush.msra.mxu3 %v987_v2  ;;  %v996_v39 = vld [vmem:[#allocation4 + $0x718] sm:$0xff] }
 0x151   :  { %1287 = vmatpush.msrb.mxu0 %v784_v3  ;;  %1304 = vmatpush.msrb.mxu1 %v860_v5  ;;  %v916_v40 = vld [vmem:[#allocation4 + $0x498] sm:$0xff]  ;;  %v1425_v3 = vld [vmem:[#allocation6 + $0xf0] sm:$0xff] }
 0x152   :  { %1248 = vmatpush.msra.mxu2 %v907_v6  ;;  %1265 = vmatpush.msra.mxu3 %v983_v7  ;;  %v992_v41 = vld [vmem:[#allocation4 + $0x6f8] sm:$0xff]  ;;  %v1423_v6 = vld [vmem:[#allocation6 + $0xe0] sm:$0xff]  ;;  %v1424_v7 = vld [vmem:[#allocation6 + $0xe8] sm:$0xff] }
 0x153   :  { %1288 = vmatpush.msrb.mxu0 %v780_v8  ;;  %1305 = vmatpush.msrb.mxu1 %v856_v9  ;;  %v912_v42 = vld [vmem:[#allocation4 + $0x478] sm:$0xff]  ;;  %v1421_v9 = vld [vmem:[#allocation6 + $0xd0] sm:$0xff] }
 0x154   :  { %1249 = vmatpush.msra.mxu2 %v903_v0  ;;  %1266 = vmatpush.msra.mxu3 %v979_v11  ;;  %v988_v43 = vld [vmem:[#allocation4 + $0x6d8] sm:$0xff] }
 0x155   :  { %1289 = vmatpush.msrb.mxu0 %v776_v13  ;;  %1306 = vmatpush.msrb.mxu1 %v852_v14  ;;  %v908_v44 = vld [vmem:[#allocation4 + $0x458] sm:$0xff]  ;;  %v1419_v13 = vld [vmem:[#allocation6 + $0xc0] sm:$0xff]  ;;  %v1420_v14 = vld [vmem:[#allocation6 + $0xc8] sm:$0xff] }
 0x156   :  { %1250 = vmatpush.msra.mxu2 %v899_v63  ;;  %1267 = vmatpush.msra.mxu3 %v975_v15  ;;  %v984_v45 = vld [vmem:[#allocation4 + $0x6b8] sm:$0xff]  ;;  %v1417_v63 = vld [vmem:[#allocation6 + $0xb0] sm:$0xff] }
 0x157   :  { %1290 = vmatpush.msrb.mxu0 %v772_v16  ;;  %1307 = vmatpush.msrb.mxu1 %v848_v4  ;;  %v904_v46 = vld [vmem:[#allocation4 + $0x438] sm:$0xff]  ;;  %v1415_v16 = vld [vmem:[#allocation6 + $0xa0] sm:$0xff]  ;;  %v1416_v4 = vld [vmem:[#allocation6 + $0xa8] sm:$0xff] }
 0x158   :  { %1251 = vmatmul.f32.vlgmr.msra.gmra.mxu2 %v2053_v12  ;;  %1291 = vmatmul.f32.vlgmr.msrb.gmra.mxu0 %v2028_v62  ;;  %v944_v62 = vld [vmem:[#allocation4 + $0x578] sm:$0xff] }
 0x159   :  { %1315 = vmatpush.msrb.mxu2 %v960_v18  ;;  %1268 = vmatpush.msra.mxu3 %v971_v19  ;;  %v980_v48 = vld [vmem:[#allocation4 + $0x698] sm:$0xff]  ;;  %v1413_v18 = vld [vmem:[#allocation6 + $0x90] sm:$0xff] }
 0x15a   :  { %1308 = vmatpush.msrb.mxu1 %v844_v17  ;;  %v900_v47 = vld [vmem:[#allocation4 + $0x418] sm:$0xff]  ;;  %1465 = vmatpush.msra.mxu0 %v1425_v3  ;;  %v1411_v17 = vld [vmem:[#allocation6 + $0x80] sm:$0xff] }
 0x15b   :  { %1316 = vmatpush.msrb.mxu2 %v956_v21  ;;  %1269 = vmatpush.msra.mxu3 %v967_v22  ;;  %v976_v49 = vld [vmem:[#allocation4 + $0x678] sm:$0xff]  ;;  %v1412_v21 = vld [vmem:[#allocation6 + $0x88] sm:$0xff]  ;;  %v1409_v22 = vld [vmem:[#allocation6 + $0x70] sm:$0xff] }
 0x15c   :  { %1309 = vmatpush.msrb.mxu1 %v840_v23  ;;  %v972_v50 = vld [vmem:[#allocation4 + $0x658] sm:$0xff]  ;;  %1466 = vmatpush.msra.mxu0 %v1423_v6  ;;  %v1444_v6 = vld [vmem:[#allocation6 + $0x188] sm:$0xff] }
 0x15d   :  { %1317 = vmatpush.msrb.mxu2 %v952_v55  ;;  %1270 = vmatpush.msra.mxu3 %v963_v10  ;;  %v968_v51 = vld [vmem:[#allocation4 + $0x638] sm:$0xff]  ;;  %v1407_v55 = vld [vmem:[#allocation6 + $0x60] sm:$0xff]  ;;  %v1408_v10 = vld [vmem:[#allocation6 + $0x68] sm:$0xff] }
 0x15e   :  { %1310 = vmatpush.msrb.mxu1 %v836_v25  ;;  %1271 = vmatmul.f32.vlgmr.msra.gmra.mxu3 %v2060_v24  ;;  %v964_v52 = vld [vmem:[#allocation4 + $0x618] sm:$0xff] }
 0x15f   :  { %1311 = vmatmul.f32.vlgmr.msrb.gmra.mxu1 %v2042_v20  ;;  %1318 = vmatpush.msrb.mxu2 %v948_v26  ;;  %v924_v20 = vld [vmem:[#allocation4 + $0x4d8] sm:$0xff]  ;;  %v1405_v26 = vld [vmem:[#allocation6 + $0x50] sm:$0xff] }
 0x160   :  { %1335 = vmatpush.msrb.mxu3 %v1024_v27  ;;  %v2079_v57 = vld [vmem:[%s2177_s4] sm:$0xf]  ;;  %1467 = vmatpush.msra.mxu0 %v1421_v9 }
 0x161   :  { %1319 = vmatpush.msrb.mxu2 %v944_v62  ;;  %v1028_v58 = vperm.slane %v2079_v57, 1  ;;  %v1426_v5 = vld [vmem:[#allocation6 + $0xf8] sm:$0xff]  ;;  %v1029_v25 = vperm.slane %v2079_v57, 2  ;;  %v1403_v62 = vld [vmem:[#allocation6 + $0x40] sm:$0xff]  ;;  %v1027_v9 = vperm.slane %v2079_v57, 0 }
 0x162   :  { %1336 = vmatpush.msrb.mxu3 %v1020_v28  ;;  %v1422_v0 = vld [vmem:[#allocation6 + $0xd8] sm:$0xff]  ;;  %1468 = vmatpush.msra.mxu0 %v1419_v13  ;;  %v1439_v13 = vld [vmem:[#allocation6 + $0x160] sm:$0xff] }
 0x163   :  { %1320 = vmatpush.msrb.mxu2 %v940_v29  ;;  %v1418_v15 = vld [vmem:[#allocation6 + $0xb8] sm:$0xff]  ;;  %v1404_v29 = vld [vmem:[#allocation6 + $0x48] sm:$0xff] }
 0x164   :  { %1337 = vmatpush.msrb.mxu3 %v1016_v30  ;;  %1469 = vmatpush.msra.mxu0 %v1417_v63  ;;  %v1414_v19 = vld [vmem:[#allocation6 + $0x98] sm:$0xff] }
 0x165   :  { %1321 = vmatpush.msrb.mxu2 %v936_v31  ;;  %v1410_v23 = vld [vmem:[#allocation6 + $0x78] sm:$0xff] }
 0x166   :  { %1338 = vmatpush.msrb.mxu3 %v1012_v32  ;;  %1470 = vmatpush.msra.mxu0 %v1415_v16  ;;  %v1406_v27 = vld [vmem:[#allocation6 + $0x58] sm:$0xff]  ;;  %v1401_v32 = vld [vmem:[#allocation6 + $0x30] sm:$0xff] }
 0x167   :  { %1322 = vmatpush.msrb.mxu2 %v932_v34  ;;  %v1402_v34 = vld [vmem:[#allocation6 + $0x38] sm:$0xff] }
 0x168   :  { %1339 = vmatpush.msrb.mxu3 %v1008_v33  ;;  %1471 = vmatpush.msra.mxu0 %v1413_v18  ;;  %v1399_v33 = vld [vmem:[#allocation6 + $0x20] sm:$0xff]  ;;  %v1446_v3 = vld [vmem:[#allocation6 + $0x198] sm:$0xff] }
 0x169   :  { %1323 = vmatpush.msrb.mxu2 %v928_v35  ;;  %v1438_v16 = vld [vmem:[#allocation6 + $0x158] sm:$0xff] }
 0x16a   :  { %1340 = vmatpush.msrb.mxu3 %v1004_v36  ;;  %1472 = vmatpush.msra.mxu0 %v1411_v17  ;;  %v1400_v36 = vld [vmem:[#allocation6 + $0x28] sm:$0xff] }
 0x16b   :  { %1324 = vmatpush.msrb.mxu2 %v924_v20 }
 0x16c   :  { %1341 = vmatpush.msrb.mxu3 %v1000_v37  ;;  %1473 = vmatpush.msra.mxu0 %v1409_v22  ;;  %v1397_v37 = vld [vmem:[#allocation6 + $0x10] sm:$0xff]  ;;  %v1436_v22 = vld [vmem:[#allocation6 + $0x148] sm:$0xff] }
 0x16d   :  { %1325 = vmatpush.msrb.mxu2 %v920_v38  ;;  %v1398_v38 = vld [vmem:[#allocation6 + $0x18] sm:$0xff] }
 0x16e   :  { %1342 = vmatpush.msrb.mxu3 %v996_v39  ;;  %1474 = vmatpush.msra.mxu0 %v1407_v55 }
 0x16f   :  { %1326 = vmatpush.msrb.mxu2 %v916_v40 }
 0x170   :  { %1343 = vmatpush.msrb.mxu3 %v992_v41  ;;  %1475 = vmatpush.msra.mxu0 %v1405_v26 }
 0x171   :  { %1327 = vmatpush.msrb.mxu2 %v912_v42  ;;  %v1395_v42 = vld [vmem:[#allocation6] sm:$0xff] }
 0x172   :  { %1344 = vmatpush.msrb.mxu3 %v988_v43  ;;  %1476 = vmatpush.msra.mxu0 %v1403_v62  ;;  %v1396_v43 = vld [vmem:[#allocation6 + $0x8] sm:$0xff]  ;;  %v1431_v62 = vld [vmem:[#allocation6 + $0x120] sm:$0xff] }
 0x173   :  { %1328 = vmatpush.msrb.mxu2 %v908_v44  ;;  %v1457_v44 = vld [vmem:[#allocation6 + $0x1f0] sm:$0xff] }
 0x174   :  { %1345 = vmatpush.msrb.mxu3 %v984_v45  ;;  %1477 = vmatpush.msra.mxu0 %v1401_v32  ;;  %v1458_v45 = vld [vmem:[#allocation6 + $0x1f8] sm:$0xff] }
 0x175   :  { %1329 = vmatpush.msrb.mxu2 %v904_v46  ;;  %1485 = vmatpush.msra.mxu1 %v1457_v44  ;;  %v1430_v32 = vld [vmem:[#allocation6 + $0x118] sm:$0xff] }
 0x176   :  { %1346 = vmatpush.msrb.mxu3 %v980_v48  ;;  %1478 = vmatpush.msra.mxu0 %v1399_v33  ;;  %v1455_v48 = vld [vmem:[#allocation6 + $0x1e0] sm:$0xff] }
 0x177   :  { %1330 = vmatpush.msrb.mxu2 %v900_v47  ;;  %v1456_v47 = vld [vmem:[#allocation6 + $0x1e8] sm:$0xff]  ;;  %1486 = vmatpush.msra.mxu1 %v1455_v48 }
 0x178   :  { %1347 = vmatpush.msrb.mxu3 %v976_v49  ;;  %1331 = vmatmul.f32.vlgmr.msrb.gmra.mxu2 %v2053_v12  ;;  %v1453_v49 = vld [vmem:[#allocation6 + $0x1d0] sm:$0xff] }
 0x179   :  { %1505 = vmatpush.msra.mxu2 %v1426_v5  ;;  %1479 = vmatpush.msra.mxu0 %v1397_v37  ;;  %v1443_v5 = vld [vmem:[#allocation6 + $0x180] sm:$0xff] }
 0x17a   :  { %1348 = vmatpush.msrb.mxu3 %v972_v50  ;;  %v1454_v50 = vld [vmem:[#allocation6 + $0x1d8] sm:$0xff]  ;;  %1487 = vmatpush.msra.mxu1 %v1453_v49  ;;  %v1427_v37 = vld [vmem:[#allocation6 + $0x100] sm:$0xff] }
 0x17b   :  { %1506 = vmatpush.msra.mxu2 %v1424_v7  ;;  %1480 = vmatpush.msra.mxu0 %v1395_v42  ;;  %v1441_v7 = vld [vmem:[#allocation6 + $0x170] sm:$0xff] }
 0x17c   :  { %1349 = vmatpush.msrb.mxu3 %v968_v51  ;;  %v1451_v51 = vld [vmem:[#allocation6 + $0x1c0] sm:$0xff] }
 0x17d   :  { %1507 = vmatpush.msra.mxu2 %v1422_v0  ;;  %1488 = vmatpush.msra.mxu1 %v1451_v51 }
 0x17e   :  { %1350 = vmatpush.msrb.mxu3 %v964_v52  ;;  %v1452_v52 = vld [vmem:[#allocation6 + $0x1c8] sm:$0xff] }
 0x17f   :  { %1351 = vmatmul.f32.vlgmr.msrb.gmra.mxu3 %v2060_v24  ;;  %1508 = vmatpush.msra.mxu2 %v1420_v14  ;;  %v1440_v14 = vld [vmem:[#allocation6 + $0x168] sm:$0xff] }
 0x180   :  { %1525 = vmatpush.msra.mxu3 %v1458_v45 }
 0x181   :  { %1509 = vmatpush.msra.mxu2 %v1418_v15  ;;  %v1437_v15 = vld [vmem:[#allocation6 + $0x150] sm:$0xff] }
 0x182   :  { %1526 = vmatpush.msra.mxu3 %v1456_v47 }
 0x183   :  { %1510 = vmatpush.msra.mxu2 %v1416_v4 }
 0x184   :  { %1527 = vmatpush.msra.mxu3 %v1454_v50 }
 0x185   :  { %1511 = vmatpush.msra.mxu2 %v1414_v19  ;;  %v1030_v19 = vperm.slane %v2079_v57, 3 }
 0x186   :  { %1528 = vmatpush.msra.mxu3 %v1452_v52 }
 0x187   :  { %1512 = vmatpush.msra.mxu2 %v1412_v21  ;;  %v1435_v21 = vld [vmem:[#allocation6 + $0x140] sm:$0xff] }
 0x189   :  { %1513 = vmatpush.msra.mxu2 %v1410_v23  ;;  %v1433_v23 = vld [vmem:[#allocation6 + $0x130] sm:$0xff] }
 0x18b   :  { %1514 = vmatpush.msra.mxu2 %v1408_v10 }
 0x18d   :  { %1515 = vmatpush.msra.mxu2 %v1406_v27  ;;  %v1434_v27 = vld [vmem:[#allocation6 + $0x138] sm:$0xff] }
 0x18f   :  { %1516 = vmatpush.msra.mxu2 %v1404_v29 }
 0x191   :  { %1517 = vmatpush.msra.mxu2 %v1402_v34 }
 0x192   :  { %v2072_v53 = vpop.f32.mrf.mxu0 }
 0x193   :  { %1518 = vmatpush.msra.mxu2 %v1400_v36  ;;  %v1053_v4 = vadd.f32 %v2072_v53, %v1027_v9  ;;  %v1432_v53 = vld [vmem:[#allocation6 + $0x128] sm:$0xff]  ;;  %v1569_v9 = vld [vmem:[%s2180_s7 + $0x20] sm:$0xff] }
 0x195   :  { %1519 = vmatpush.msra.mxu2 %v1398_v38  ;;  %v1428_v38 = vld [vmem:[#allocation6 + $0x108] sm:$0xff] }
 0x197   :  { %1520 = vmatpush.msra.mxu2 %v1396_v43 }
 0x198   :  { %v2074_v54 = vpop.f32.mrf.mxu1 }
 0x199   :  { %v1073_v55 = vadd.f32 %v2074_v54, %v1053_v4  ;;  %v1429_v54 = vld [vmem:[#allocation6 + $0x110] sm:$0xff]  ;;  %v1565_v4 = vld [vmem:[%s2180_s7] sm:$0xff] }
 0x19a   :  { %v1132_v56 = vpop.f32.mrf.mxu0 }
 0x19b   :  { %v1133_v12 = vadd.f32 %v1132_v56, %v1028_v58  ;;  %v1449_v58 = vld [vmem:[#allocation6 + $0x1b0] sm:$0xff]  ;;  %v1450_v56 = vld [vmem:[#allocation6 + $0x1b8] sm:$0xff] }
 0x19c   :  { %1489 = vmatpush.msra.mxu1 %v1449_v58  ;;  %1529 = vmatpush.msra.mxu3 %v1450_v56 }
 0x1a0   :  { %v1152_v59 = vpop.f32.mrf.mxu1 }
 0x1a1   :  { %v1153_v60 = vadd.f32 %v1152_v59, %v1133_v12 }
 0x1b2   :  { %v1212_v28 = vpop.f32.mrf.mxu0 }
 0x1b3   :  { %v1213_v31 = vadd.f32 %v1212_v28, %v1029_v25 }
 0x1b9   :  { %v2082_v61 = vpop.f32.mrf.mxu2  ;;  %v1232_v30 = vpop.f32.mrf.mxu1 }
 0x1ba   :  { %v1233_v20 = vadd.f32 %v1232_v30, %v1213_v31  ;;  %v1093_v28 = vadd.f32 %v2082_v61, %v1073_v55 }
 0x1bf   :  { %v2084_v1 = vpop.f32.mrf.mxu3 }
 0x1c0   :  { %v1113_v34 = vadd.f32 %v2084_v1, %v1093_v28 }
 0x1c2   :  { %v1172_v24 = vpop.f32.mrf.mxu2 }
 0x1c3   :  { %v1173_v2 = vadd.f32 %v1172_v24, %v1153_v60  ;;  %v1447_v60 = vld [vmem:[#allocation6 + $0x1a0] sm:$0xff]  ;;  %v1448_v24 = vld [vmem:[#allocation6 + $0x1a8] sm:$0xff] }
 0x1c4   :  { %1490 = vmatpush.msra.mxu1 %v1447_v60  ;;  %1530 = vmatpush.msra.mxu3 %v1448_v24  ;;  %v1578_v60 = vld [vmem:[%s2180_s7 + $0x68] sm:$0xff]  ;;  %v1576_v24 = vld [vmem:[%s2180_s7 + $0x58] sm:$0xff] }
 0x1c6   :  { %1531 = vmatpush.msra.mxu3 %v1446_v3  ;;  %v1574_v3 = vld [vmem:[%s2180_s7 + $0x48] sm:$0xff] }
 0x1c8   :  { %v1192_v8 = vpop.f32.mrf.mxu3  ;;  %1532 = vmatpush.msra.mxu3 %v1444_v6  ;;  %v1572_v6 = vld [vmem:[%s2180_s7 + $0x38] sm:$0xff] }
 0x1c9   :  { %v2086_v11 = vadd.f32 %v1192_v8, %v1173_v2  ;;  %v1445_v2 = vld [vmem:[#allocation6 + $0x190] sm:$0xff]  ;;  %v1442_v8 = vld [vmem:[#allocation6 + $0x178] sm:$0xff] }
 0x1ca   :  { %1491 = vmatpush.msra.mxu1 %v1445_v2  ;;  %1533 = vmatpush.msra.mxu3 %v1442_v8  ;;  %v1575_v2 = vld [vmem:[%s2180_s7 + $0x50] sm:$0xff]  ;;  %v1570_v8 = vld [vmem:[%s2180_s7 + $0x28] sm:$0xff] }
 0x1cc   :  { %1492 = vmatpush.msra.mxu1 %v1443_v5  ;;  %1534 = vmatpush.msra.mxu3 %v1440_v14  ;;  %v1573_v5 = vld [vmem:[%s2180_s7 + $0x40] sm:$0xff] }
 0x1cd   :  { %v1459_v14 = vld [vmem:[%s2179_s6] sm:$0x3] }
 0x1ce   :  { %1493 = vmatpush.msra.mxu1 %v1441_v7  ;;  %1535 = vmatpush.msra.mxu3 %v1438_v16  ;;  %v1571_v7 = vld [vmem:[%s2180_s7 + $0x30] sm:$0xff] }
 0x1d0   :  { %1494 = vmatpush.msra.mxu1 %v1439_v13  ;;  %1536 = vmatpush.msra.mxu3 %v1436_v22  ;;  %v1567_v13 = vld [vmem:[%s2180_s7 + $0x10] sm:$0xff] }
 0x1d2   :  { %1495 = vmatpush.msra.mxu1 %v1437_v15  ;;  %1537 = vmatpush.msra.mxu3 %v1434_v27  ;;  %v1566_v15 = vld [vmem:[%s2180_s7 + $0x8] sm:$0xff] }
 0x1d4   :  { %1496 = vmatpush.msra.mxu1 %v1435_v21  ;;  %1538 = vmatpush.msra.mxu3 %v1432_v53 }
 0x1d5   :  { %v1292_v10 = vpop.f32.mrf.mxu0 }
 0x1d6   :  { %1497 = vmatpush.msra.mxu1 %v1433_v23  ;;  %v1293_v57 = vadd.f32 %v1292_v10, %v1030_v19  ;;  %1539 = vmatpush.msra.mxu3 %v1430_v32 }
 0x1d8   :  { %1498 = vmatpush.msra.mxu1 %v1431_v62  ;;  %1540 = vmatpush.msra.mxu3 %v1428_v38  ;;  %v1630_v38 = vld [vmem:[%s2182_s9 + $0x8] sm:$0xff] }
 0x1da   :  { %1499 = vmatpush.msra.mxu1 %v1429_v54 }
 0x1db   :  { %v1252_v35 = vpop.f32.mrf.mxu2 }
 0x1dc   :  { %v1253_v39 = vadd.f32 %v1252_v35, %v1233_v20  ;;  %v1312_v29 = vpop.f32.mrf.mxu1  ;;  %1500 = vmatpush.msra.mxu1 %v1427_v37 }
 0x1dd   :  { %v1313_v36 = vadd.f32 %v1312_v29, %v1293_v57 }
 0x1e1   :  { %v1272_v40 = vpop.f32.mrf.mxu3 }
 0x1e2   :  { %v1273_v41 = vadd.f32 %v1272_v40, %v1253_v39 }
 0x1e4   :  { %v1743_v46 = vmul.f32 -1.442695, %v1273_v41 }
 0x1e6   :  { %1782 = vpow2.f32 %v1743_v46 }
 0x1ec   :  { %v1783_v12 = vpop.eup %1782 }
 0x1ed   :  { %v1361_v59 = vadd.f32 1.0, %v1783_v12  ;;  %v1580_v12 = vld [vmem:[%s2180_s7 + $0x78] sm:$0xff] }
 0x1ee   :  { %1585 = vmatpush.msrb.mxu0 %v1580_v12 }
 0x1ef   :  { %1784 = vrcp.f32 %v1361_v59  ;;  %v1374_v17 = vand.u32 2147483648, %v1361_v59  ;;  %v1372_v26 = vand.u32 2147483647, %v1361_v59  ;;  %vm1368_vm1 = vweird.f32 %v1361_v59 }
 0x1f1   :  { %v1375_v31 = vor.u32 1.1754944e-38, %v1374_v17  ;;  %vm1373_vm3 = vcmp.eq.f32.partialorder %v1372_v26, 8.507059e+37 }
 0x1f5   :  { %v1785_v0 = vpop.eup %1784 }
 0x1f6   :  { %v1364_v63 = vmul.f32 %v1785_v0, %v1361_v59  ;;  %vm1369_vm0 = vweird.f32 %v1785_v0  ;;  %v1579_v59 = vld [vmem:[%s2180_s7 + $0x70] sm:$0xff] }
 0x1f7   :  { %vm1370_vm2 = vmor %vm1368_vm1, %vm1369_vm0  ;;  %1586 = vmatpush.msrb.mxu0 %v1579_v59  ;;  %vm1633_vm0 = vcmask 261120   ;;  %vm1669_vm1 = vcmask 1043456  }
 0x1f8   :  { %v1365_v18 = vsub.f32 1.0, %v1364_v63  ;;  %v1462_v63 = vperm.slane %v1459_v14, 1 }
 0x1f9   :  { %1587 = vmatpush.msrb.mxu0 %v1578_v60  ;;  %v1664_v60 = vld [vmem:[%s2183_s10] sm:$0xf] }
 0x1fa   :  { %v1366_v25 = vmul.f32 %v1785_v0, %v1365_v18  ;;  %1748 = vmatpush.msk.msrb.mxu2 %vm1669_vm1, %v1664_v60 }
 0x1fb   :  { %v1332_v33 = vpop.f32.mrf.mxu2 }
 0x1fc   :  { %v1367_v30 = vadd.f32 %v1785_v0, %v1366_v25  ;;  %v1333_v39 = vadd.f32 %v1332_v33, %v1313_v36  ;;  %v1461_v25 = vperm.slane %v1459_v14, 0  ;;  %v1632_v36 = vld [vmem:[%s2182_s9 + $0x18] sm:$0xff] }
 0x1fd   :  { %1649 = vmatpush.msrb.mxu1 %v1632_v36 }
 0x1fe   :  { %v1371_v35 = vsel %vm1370_vm2, %v1785_v0, %v1367_v30  ;;  %v1568_v0 = vld [vmem:[%s2180_s7 + $0x18] sm:$0xff]  ;;  %vm1665_vm2 = vcmask 31744  }
 0x1ff   :  { %v1376_v20 = vsel %vm1373_vm3, %v1375_v31, %v1371_v35  ;;  %v1765_v35 = vld [vmem:[%s2181_s8] ss:$0 sm:$0xff]  ;;  %s1889_s8 = smov 96   ;;  %vm1657_vm3 = vcmask 25600  }
 0x200   :  { %v1393_v61 = vmul.f32 %v1376_v20, %v1113_v34  ;;  %v1631_v20 = vld [vmem:[%s2182_s9 + $0x10] sm:$0xff] }
 0x201   :  { %1650 = vmatpush.msrb.mxu1 %v1631_v20 }
 0x202   :  { %v1352_v40 = vpop.f32.mrf.mxu3  ;;  %1481 = vmatmul.f32.vlgmr.msra.gmra.mxu0 %v1393_v61  ;;  %1521 = vmatmul.f32.vlgmr.msra.gmra.mxu2 %v1393_v61 }
 0x203   :  { %v1353_v41 = vadd.f32 %v1352_v40, %v1333_v39  ;;  %1651 = vmatpush.msrb.mxu1 %v1630_v38 }
 0x205   :  { %v1744_v1 = vmul.f32 -1.442695, %v1353_v41 }
 0x207   :  { %1786 = vpow2.f32 %v1744_v1 }
 0x20d   :  { %v1787_v42 = vpop.eup %1786 }
 0x20e   :  { %v1362_v43 = vadd.f32 1.0, %v1787_v42 }
 0x210   :  { %1788 = vrcp.f32 %v1362_v43  ;;  %v1389_v48 = vand.u32 2147483648, %v1362_v43  ;;  %v1387_v49 = vand.u32 2147483647, %v1362_v43  ;;  %vm1383_vm5 = vweird.f32 %v1362_v43 }
 0x212   :  { %v1390_v51 = vor.u32 1.1754944e-38, %v1389_v48  ;;  %vm1388_vm7 = vcmp.eq.f32.partialorder %v1387_v49, 8.507059e+37 }
 0x216   :  { %v1789_v44 = vpop.eup %1788 }
 0x217   :  { %v1379_v45 = vmul.f32 %v1789_v44, %v1362_v43  ;;  %vm1384_vm4 = vweird.f32 %v1789_v44 }
 0x218   :  { %vm1385_vm6 = vmor %vm1383_vm5, %vm1384_vm4 }
 0x219   :  { %v1380_v46 = vsub.f32 1.0, %v1379_v45 }
 0x21b   :  { %v1381_v47 = vmul.f32 %v1789_v44, %v1380_v46 }
 0x21d   :  { %v1382_v50 = vadd.f32 %v1789_v44, %v1381_v47 }
 0x21f   :  { %v1386_v52 = vsel %vm1385_vm6, %v1789_v44, %v1382_v50 }
 0x220   :  { %v1391_v58 = vsel %vm1388_vm7, %v1390_v51, %v1386_v52  ;;  %v1629_v51 = vld [vmem:[%s2182_s9] sm:$0xff] }
 0x221   :  { %v1394_v56 = vmul.f32 %v1391_v58, %v2086_v11  ;;  %v1577_v11 = vld [vmem:[%s2180_s7 + $0x60] sm:$0xff]  ;;  %1652 = vmatpush.msrb.mxu1 %v1629_v51 }
 0x222   :  { %1588 = vmatpush.msrb.mxu0 %v1577_v11 }
 0x223   :  { %1501 = vmatmul.f32.vlgmr.msra.gmra.mxu1 %v1394_v56  ;;  %1541 = vmatmul.f32.vlgmr.msra.gmra.mxu3 %v1394_v56  ;;  %v1697_v56 = vld [vmem:[%s2184_s11] sm:$0xf] }
 0x224   :  { %1589 = vmatpush.msrb.mxu0 %v1576_v24  ;;  %1750 = vmatpush.msk.msrb.mxu3 %vm1669_vm1, %v1697_v56 }
 0x226   :  { %1590 = vmatpush.msrb.mxu0 %v1575_v2 }
 0x228   :  { %1591 = vmatpush.msrb.mxu0 %v1574_v3 }
 0x22a   :  { %1592 = vmatpush.msrb.mxu0 %v1573_v5  ;;  %v1890_v5 = vmov 0  }
 0x22b   :  { %1763 = vset.pattern.permute.xlu1 %v1890_v5  ;;  %1764 = vset.pattern.permute.xlu0 %v1890_v5 }
 0x22c   :  { %1593 = vmatpush.msrb.mxu0 %v1572_v6 }
 0x22e   :  { %1594 = vmatpush.msrb.mxu0 %v1571_v7 }
 0x230   :  { %1595 = vmatpush.msrb.mxu0 %v1570_v8 }
 0x232   :  { %1596 = vmatpush.msrb.mxu0 %v1569_v9 }
 0x234   :  { %1597 = vmatpush.msrb.mxu0 %v1568_v0 }
 0x236   :  { %1598 = vmatpush.msrb.mxu0 %v1567_v13 }
 0x238   :  { %1599 = vmatpush.msrb.mxu0 %v1566_v15 }
 0x23a   :  { %1600 = vmatpush.msrb.mxu0 %v1565_v4 }
 0x27f   :  { %v1482_v27 = vpop.f32.mrf.mxu0 }
 0x280   :  { %v1483_v30 = vadd.f32 %v1482_v27, %v1461_v25 }
 0x285   :  { %v1522_v16 = vpop.f32.mrf.mxu2 }
 0x286   :  { %v1523_v18 = vadd.f32 %v1522_v16, %v1462_v63 }
 0x2a0   :  { %v1502_v29 = vpop.f32.mrf.mxu1 }
 0x2a1   :  { %v1503_v54 = vadd.f32 %v1502_v29, %v1483_v30 }
 0x2a6   :  { %v1542_v19 = vpop.f32.mrf.mxu3 }
 0x2a7   :  { %v1543_v17 = vadd.f32 %v1542_v19, %v1523_v18 }
 0x2a9   :  { %v1745_v21 = vmul.f32 -1.442695, %v1543_v17 }
 0x2ab   :  { %1790 = vpow2.f32 %v1745_v21 }
 0x2b1   :  { %v1791_v22 = vpop.eup %1790 }
 0x2b2   :  { %v1548_v23 = vadd.f32 1.0, %v1791_v22 }
 0x2b4   :  { %1792 = vrcp.f32 %v1548_v23  ;;  %v1560_v62 = vand.u32 2147483648, %v1548_v23  ;;  %v1558_v28 = vand.u32 2147483647, %v1548_v23  ;;  %vm1554_vm9 = vweird.f32 %v1548_v23 }
 0x2b6   :  { %v1561_v31 = vor.u32 1.1754944e-38, %v1560_v62  ;;  %vm1559_vm11 = vcmp.eq.f32.partialorder %v1558_v28, 8.507059e+37 }
 0x2ba   :  { %v1793_v55 = vpop.eup %1792 }
 0x2bb   :  { %v1550_v10 = vmul.f32 %v1793_v55, %v1548_v23  ;;  %vm1555_vm8 = vweird.f32 %v1793_v55 }
 0x2bc   :  { %vm1556_vm10 = vmor %vm1554_vm9, %vm1555_vm8 }
 0x2bd   :  { %v1551_v26 = vsub.f32 1.0, %v1550_v10 }
 0x2bf   :  { %v1552_v53 = vmul.f32 %v1793_v55, %v1551_v26 }
 0x2c1   :  { %v1553_v57 = vadd.f32 %v1793_v55, %v1552_v53 }
 0x2c3   :  { %v1557_v32 = vsel %vm1556_vm10, %v1793_v55, %v1553_v57 }
 0x2c4   :  { %v1562_v34 = vsel %vm1559_vm11, %v1561_v31, %v1557_v32 }
 0x2c5   :  { %v1564_v33 = vmul.f32 %v1562_v34, %v1503_v54 }
 0x2c7   :  { %1601 = vmatmul.f32.vlgmr.msrb.gmra.mxu0 %v1564_v33 }
 0x344   :  { %v1602_v61 = vpop.f32.mrf.mxu0 }
 0x345   :  { %v1603_v37 = vadd.f32 %v1765_v35, %v1602_v61 }
 0x347   :  { %v1746_v39 = vmul.f32 -1.442695, %v1603_v37 }
 0x349   :  { %1794 = vpow2.f32 %v1746_v39 }
 0x34f   :  { %v1795_v40 = vpop.eup %1794 }
 0x350   :  { %v1608_v41 = vadd.f32 1.0, %v1795_v40 }
 0x352   :  { %1796 = vrcp.f32 %v1608_v41  ;;  %v1620_v44 = vand.u32 2147483648, %v1608_v41  ;;  %v1618_v46 = vand.u32 2147483647, %v1608_v41  ;;  %vm1614_vm13 = vweird.f32 %v1608_v41 }
 0x354   :  { %v1621_v47 = vor.u32 1.1754944e-38, %v1620_v44  ;;  %vm1619_vm15 = vcmp.eq.f32.partialorder %v1618_v46, 8.507059e+37 }
 0x358   :  { %v1797_v1 = vpop.eup %1796 }
 0x359   :  { %v1610_v42 = vmul.f32 %v1797_v1, %v1608_v41  ;;  %vm1615_vm12 = vweird.f32 %v1797_v1 }
 0x35a   :  { %vm1616_vm14 = vmor %vm1614_vm13, %vm1615_vm12 }
 0x35b   :  { %v1611_v43 = vsub.f32 1.0, %v1610_v42 }
 0x35d   :  { %v1612_v45 = vmul.f32 %v1797_v1, %v1611_v43 }
 0x35f   :  { %v1613_v48 = vadd.f32 %v1797_v1, %v1612_v45 }
 0x361   :  { %v1617_v49 = vsel %vm1616_vm14, %v1797_v1, %v1613_v48 }
 0x362   :  { %v1622_v50 = vsel %vm1619_vm15, %v1621_v47, %v1617_v49 }
 0x363   :  { %1625 = vrot.lane.b32.xlu0 %v1622_v50, %s1889_s8 }
 0x3d5   :  { %v1626_v52 = vpop.permute.xlu0 %1625 }
 0x3d6   :  { %v1628_v58 = vmul.f32 %v1626_v52, %v1603_v37 }
 0x3d8   :  { %1747 = vmatmul.msk.f32.vlgmr.msrb.gmra.mxu1 %vm1633_vm0, %v1628_v58 }
 0x455   :  { %v1654_v12 = vpop.f32.mrf.mxu1 }
 0x456   :  { %1751 = vmatmul.msk.f32.vlgmr.msrb.gmra.mxu3 %vm1665_vm2, %v1654_v12  ;;  %v1658_v59 = vsel %vm1657_vm3, %v1654_v12, -inf }
 0x457   :  { %1659 = vmax.xlane.f32.xlu0 %v1658_v59 }
 0x4ca   :  { %v1660_v11 = vpop.xlane.xlu0 %1659 }
 0x4cb   :  { %v1661_v24 = vsub.f32 %v1654_v12, %v1660_v11 }
 0x4cd   :  { %v1662_v2 = vmul.f32 1.442695, %v1661_v24 }
 0x4cf   :  { %1798 = vpow2.f32 %v1662_v2 }
 0x4d5   :  { %v1799_v3 = vpop.eup %1798 }
 0x4d6   :  { %1749 = vmatmul.msk.f32.vlgmr.msrb.gmra.mxu2 %vm1665_vm2, %v1799_v3 }
 0x4d9   :  { %v1721_v0 = vpop.f32.mrf.mxu3 }
 0x559   :  { %v1690_v6 = vpop.f32.mrf.mxu2 }
 0x55a   :  { %1800 = vlog2.f32 %v1690_v6 }
 0x560   :  { %v1801_v7 = vpop.eup %1800 }
 0x561   :  { %v1694_v8 = vmul.f32 0.6931472, %v1801_v7 }
 0x563   :  { %v1696_v9 = vadd.f32 %v1694_v8, %v1660_v11 }
 0x565   :  { %1726 = vperm.xlu1 %1763, %v1696_v9  }
 0x5d7   :  { %v1727_v13 = vpop.permute.xlu1 %1726 }
 0x5d8   :  { %v1729_v14 = vsub.f32 %v1721_v0, %v1727_v13 }
 0x5da   :  { %v1730_v63 = vmul.f32 1.442695, %v1729_v14 }
 0x5dc   :  { %1802 = vpow2.f32 %v1730_v63 }
 0x5e2   :  { %v1803_v15 = vpop.eup %1802 }
 0x5e3   :  { %1732 = vst.msk [vmem:[%s2185_s12] sm:$0x3] %vm1657_vm3, %v1803_v15 }
 0x5e4   :  { %1737 = vsyncpa [#allocation3], 1 }
 0x5e5   :  { %1738 = vsyncpa [#allocation5], 1 }

</bundles_post_ra>
